<compile_context>
chip_gen: v5e
topology: v5e:2x2
jax: 0.10.0
libtpu: 0.0.40
codegen_flags: <defaults>
</compile_context>

<pallas_src>
import jax
import jax.numpy as jnp
import numpy as np
from jax import lax
from jax.experimental import pallas as pl
from jax.experimental.pallas import tpu as pltpu


def _rup(x, m):
    return ((x + m - 1) // m) * m


def _pad_to(x, shape):
    return jnp.pad(x, [(0, s - d) for d, s in zip(x.shape, shape)])


def _make_kernel(node_dim, d_pad):
    D = node_dim          # true node feature dim (LayerNorm divisor / lane mask)
    Dp = d_pad            # lane-padded node feature dim (multiple of 128)
    eps = 1e-5
    f32 = jnp.float32

    def kernel(src_ref, dst_ref, edge_ref, node_ref,
               w1_ref, vec1_ref, w2_ref, wg_ref, bg_ref,
               gruw_ref, grub_ref,
               out_ref, agg_ref):
        i = pl.program_id(0)
        nsteps = pl.num_programs(0)

        @pl.when(i == 0)
        def _():
            agg_ref[...] = jnp.zeros_like(agg_ref)

        node = node_ref[...].astype(f32)      # (Np, Dp), resident
        edge = edge_ref[...].astype(f32)      # (tE, Dep), streamed
        tE = edge.shape[0]
        Np = node.shape[0]

        # --- gather src/dst node features via one-hot matmuls (MXU) ---
        iota_en = lax.broadcasted_iota(jnp.int32, (tE, Np), 1)
        src_oh = (iota_en == src_ref[...]).astype(f32)        # (tE, Np)
        dst_oh = (iota_en == dst_ref[...]).astype(f32)        # (tE, Np); padded edges -> all-zero row
        src_feat = jnp.dot(src_oh, node, preferred_element_type=f32)   # (tE, Dp)
        dst_feat = jnp.dot(dst_oh, node, preferred_element_type=f32)   # (tE, Dp)

        # --- message MLP: Linear -> LayerNorm -> ReLU -> Linear (single stacked-K matmul) ---
        x = jnp.concatenate([src_feat, dst_feat, edge], axis=1)         # (tE, 2Dp+Dep)
        h1 = jnp.dot(x, w1_ref[...], preferred_element_type=f32) + vec1_ref[0:1, :]

        # LayerNorm over the true D columns (padded columns of h1 are exactly zero).
        mean = jnp.sum(h1, axis=-1, keepdims=True) * (1.0 / D)
        xc = h1 - mean
        lane = lax.broadcasted_iota(jnp.int32, h1.shape, 1)
        var = jnp.sum(jnp.where(lane < D, xc * xc, 0.0), axis=-1, keepdims=True) * (1.0 / D)
        h1 = xc * lax.rsqrt(var + eps) * vec1_ref[1:2, :] + vec1_ref[2:3, :]
        h1 = jnp.maximum(h1, 0.0)

        msg = jnp.dot(h1, w2_ref[...], preferred_element_type=f32) + vec1_ref[3:4, :]

        # --- edge gate as a tiny matmul ---
        gate = jax.nn.sigmoid(
            jnp.dot(edge, wg_ref[...], preferred_element_type=f32) + bg_ref[...])   # (tE, 1)
        msg = msg * gate

        # --- scatter-add (index_add_ over dst): reuse dst_oh, contract over the edge axis ---
        agg_ref[...] += lax.dot_general(
            dst_oh, msg, (((0,), (0,)), ((), ())), preferred_element_type=f32)      # (Np, Dp)

        # --- GRUCell(input=agg, hidden=node) on the last edge tile ---
        @pl.when(i == nsteps - 1)
        def _():
            agg = agg_ref[...]
            x2 = jnp.concatenate([agg, node], axis=1)                     # (Np, 2Dp)
            # fused r/z gates: one K = 2*Dp matmul
            rz = jax.nn.sigmoid(
                jnp.dot(x2, gruw_ref[:, 0:2 * Dp], preferred_element_type=f32)
                + grub_ref[0:1, 0:2 * Dp] + grub_ref[1:2, 0:2 * Dp])
            r = rz[:, 0:Dp]
            z = rz[:, Dp:2 * Dp]
            gi_n = (jnp.dot(agg, gruw_ref[0:Dp, 2 * Dp:3 * Dp], preferred_element_type=f32)
                    + grub_ref[0:1, 2 * Dp:3 * Dp])
            gh_n = (jnp.dot(node, gruw_ref[Dp:2 * Dp, 2 * Dp:3 * Dp], preferred_element_type=f32)
                    + grub_ref[1:2, 2 * Dp:3 * Dp])
            n = jnp.tanh(gi_n + r * gh_n)
            out_ref[...] = ((1.0 - z) * n + z * node).astype(out_ref.dtype)

    return kernel


def message_passing_forward(node_features, edge_indices, edge_features, params,
                            *, edge_tile=128):
    N, D = node_features.shape
    E, De = edge_features.shape

    Dp = _rup(D, 128)              # lane-dense node feature dim
    Dep = _rup(De, 128)            # lane-dense edge feature dim
    Np = _rup(N, 8)                # sublane-aligned node count
    tE = _rup(min(edge_tile, _rup(E, 8)), 8)   # edge tile, multiple of 8 sublanes
    Ep = _rup(E, tE)

    src = edge_indices[0].astype(jnp.int32)
    dst = edge_indices[1].astype(jnp.int32)
    src_p = _pad_to(src, (Ep,)).reshape(Ep, 1)
    # padded edges point at node index Np (matches nothing) -> zero scatter contribution
    dst_p = jnp.pad(dst, (0, Ep - E), constant_values=Np).reshape(Ep, 1)
    edge_p = _pad_to(edge_features.astype(jnp.float32), (Ep, Dep))
    node_p = _pad_to(node_features.astype(jnp.float32), (Np, Dp))

    # --- pack / transpose / lane-pad parameters (PyTorch (out,in) -> (in,out)) ---
    w1t = params["w1"].T                               # (2D+De, D)
    w1_p = jnp.concatenate([
        _pad_to(w1t[:D], (Dp, Dp)),                    # src block
        _pad_to(w1t[D:2 * D], (Dp, Dp)),               # dst block
        _pad_to(w1t[2 * D:], (Dep, Dp)),               # edge block
    ], axis=0)                                         # (2Dp+Dep, Dp)
    vec1_p = jnp.stack([
        _pad_to(params["b1"], (Dp,)),
        _pad_to(params["ln_g"], (Dp,)),
        _pad_to(params["ln_b"], (Dp,)),
        _pad_to(params["b2"], (Dp,)),
    ])                                                 # (4, Dp)
    w2_p = _pad_to(params["w2"].T, (Dp, Dp))
    wg_p = _pad_to(params["wg"].T, (Dep, 1))
    bg_p = params["bg"].reshape(1, 1)

    def _pad_gate_w(wt):   # (D, 3D) -> (Dp, 3Dp), each gate padded to a Dp-wide block
        return jnp.concatenate(
            [_pad_to(wt[:, g * D:(g + 1) * D], (Dp, Dp)) for g in range(3)], axis=1)

    def _pad_gate_b(b):    # (3D,) -> (3Dp,)
        return jnp.concatenate(
            [_pad_to(b[g * D:(g + 1) * D], (Dp,)) for g in range(3)])

    gruw_p = jnp.concatenate(
        [_pad_gate_w(params["w_ih"].T), _pad_gate_w(params["w_hh"].T)], axis=0)  # (2Dp, 3Dp)
    grub_p = jnp.stack(
        [_pad_gate_b(params["b_ih"]), _pad_gate_b(params["b_hh"])])              # (2, 3Dp)

    kernel = _make_kernel(D, Dp)
    n_tiles = Ep // tE

    res = pl.pallas_call(
        kernel,
        out_shape=jax.ShapeDtypeStruct((Np, Dp), node_features.dtype),
        grid_spec=pltpu.PrefetchScalarGridSpec(
            num_scalar_prefetch=0,
            grid=(n_tiles,),
            in_specs=[
                pl.BlockSpec((tE, 1), lambda i: (i, 0)),              # src indices (streamed)
                pl.BlockSpec((tE, 1), lambda i: (i, 0)),              # dst indices (streamed)
                pl.BlockSpec((tE, Dep), lambda i: (i, 0)),            # edge features (streamed)
                pl.BlockSpec((Np, Dp), lambda i: (0, 0)),             # node table (resident)
                pl.BlockSpec((2 * Dp + Dep, Dp), lambda i: (0, 0)),   # W1 (stacked)
                pl.BlockSpec((4, Dp), lambda i: (0, 0)),              # b1 | ln_g | ln_b | b2
                pl.BlockSpec((Dp, Dp), lambda i: (0, 0)),             # W2
                pl.BlockSpec((Dep, 1), lambda i: (0, 0)),             # gate weight
                pl.BlockSpec((1, 1), lambda i: (0, 0)),               # gate bias
                pl.BlockSpec((2 * Dp, 3 * Dp), lambda i: (0, 0)),     # GRU W (ih | hh stacked)
                pl.BlockSpec((2, 3 * Dp), lambda i: (0, 0)),          # GRU b (ih ; hh)
            ],
            out_specs=pl.BlockSpec((Np, Dp), lambda i: (0, 0)),
            scratch_shapes=[pltpu.VMEM((Np, Dp), jnp.float32)],       # message accumulator
        ),
        compiler_params=pltpu.CompilerParams(
            dimension_semantics=("arbitrary",),      # edge axis is a reduction
            vmem_limit_bytes=32 * 1024 * 1024,       # safe on v5e / v6e / v7x
        ),
    )(src_p, dst_p, edge_p, node_p, w1_p, vec1_p, w2_p, wg_p, bg_p, gruw_p, grub_p)

    return res[:N, :D]


def init_params(key, node_dim, edge_dim):
    """Parameters in PyTorch conventions (Linear weight = (out, in))."""
    D, De = node_dim, edge_dim
    ks = jax.random.split(key, 8)
    s = 0.1
    return {
        "w1": jax.random.normal(ks[0], (D, 2 * D + De), jnp.float32) * s,
        "b1": jax.random.normal(ks[1], (D,), jnp.float32) * s,
        "ln_g": jnp.ones((D,), jnp.float32),
        "ln_b": jnp.zeros((D,), jnp.float32),
        "w2": jax.random.normal(ks[2], (D, D), jnp.float32) * s,
        "b2": jax.random.normal(ks[3], (D,), jnp.float32) * s,
        "wg": jax.random.normal(ks[4], (1, De), jnp.float32) * s,
        "bg": jnp.zeros((1,), jnp.float32),
        "w_ih": jax.random.normal(ks[5], (3 * D, D), jnp.float32) * s,   # gates r|z|n
        "w_hh": jax.random.normal(ks[6], (3 * D, D), jnp.float32) * s,
        "b_ih": jax.random.normal(ks[7], (3 * D,), jnp.float32) * s,
        "b_hh": jnp.zeros((3 * D,), jnp.float32),
    }


def ref_forward(node_features, edge_indices, edge_features, p):
    """Pure-JAX reference replicating the PyTorch forward."""
    src, dst = edge_indices
    D = node_features.shape[1]
    x = jnp.concatenate([node_features[src], node_features[dst], edge_features], axis=1)
    h = x @ p["w1"].T + p["b1"]
    mu = h.mean(-1, keepdims=True)
    var = ((h - mu) ** 2).mean(-1, keepdims=True)
    h = (h - mu) / jnp.sqrt(var + 1e-5) * p["ln_g"] + p["ln_b"]
    h = jnp.maximum(h, 0.0)
    msg = h @ p["w2"].T + p["b2"]
    gate = jax.nn.sigmoid(edge_features @ p["wg"].T + p["bg"])
    msg = msg * gate
    agg = jnp.zeros_like(node_features).at[dst].add(msg)
    gi = agg @ p["w_ih"].T + p["b_ih"]
    gh = node_features @ p["w_hh"].T + p["b_hh"]
    r = jax.nn.sigmoid(gi[:, :D] + gh[:, :D])
    z = jax.nn.sigmoid(gi[:, D:2 * D] + gh[:, D:2 * D])
    n = jnp.tanh(gi[:, 2 * D:] + r * gh[:, 2 * D:])
    return (1.0 - z) * n + z * node_features


if __name__ == "__main__":
    N, E = 16, 24              # nodes, edges
    node_dim, edge_dim = 32, 16

    key = jax.random.PRNGKey(0)
    k_node, k_edge, k_idx, k_param = jax.random.split(key, 4)

    node_features = jax.random.normal(k_node, (N, node_dim), jnp.float32)
    edge_features = jax.random.normal(k_edge, (E, edge_dim), jnp.float32)
    edge_indices = jax.random.randint(k_idx, (2, E), 0, N, dtype=jnp.int32)
    params = init_params(k_param, node_dim, edge_dim)

    # edge_tile=8 -> 3 grid steps: exercises the zero-init / accumulate / finalize path.
    out = message_passing_forward(node_features, edge_indices, edge_features,
                                  params, edge_tile=8)
    out = jax.block_until_ready(out)

    ref = jax.block_until_ready(
        ref_forward(node_features, edge_indices, edge_features, params))
    np.testing.assert_allclose(np.asarray(out), np.asarray(ref), rtol=1e-4, atol=1e-4)

    print("KERNEL_OK")
</pallas_src>

<mosaic_0001>
module attributes {stable_mosaic.version = 11 : i64} {
  func.func @kernel(%arg0: i32, %arg1: memref<8x1xi32, #tpu.memory_space<vmem>>, %arg2: memref<8x1xi32, #tpu.memory_space<vmem>>, %arg3: memref<8x128xf32, #tpu.memory_space<vmem>>, %arg4: memref<16x128xf32, #tpu.memory_space<vmem>>, %arg5: memref<384x128xf32, #tpu.memory_space<vmem>>, %arg6: memref<4x128xf32, #tpu.memory_space<vmem>>, %arg7: memref<128x128xf32, #tpu.memory_space<vmem>>, %arg8: memref<128x1xf32, #tpu.memory_space<vmem>>, %arg9: memref<1x1xf32, #tpu.memory_space<vmem>>, %arg10: memref<256x384xf32, #tpu.memory_space<vmem>>, %arg11: memref<2x384xf32, #tpu.memory_space<vmem>>, %arg12: memref<16x128xf32, #tpu.memory_space<vmem>>, %arg13: memref<16x128xf32, #tpu.memory_space<vmem>>) attributes {dimension_semantics = [#tpu.dimension_semantics<arbitrary>], iteration_bounds = array<i64: 3>, scalar_prefetch = 0 : i64, scratch_operands = 1 : i64, tpu.core_type = #tpu.core_type<tc>, window_params = [{transform_indices = @transform_0, window_bounds = array<i64: 8, 1>}, {transform_indices = @transform_1, window_bounds = array<i64: 8, 1>}, {transform_indices = @transform_2, window_bounds = array<i64: 8, 128>}, {pipeline_mode = #tpu.pipeline_mode<synchronous>, transform_indices = @transform_3, window_bounds = array<i64: 16, 128>}, {pipeline_mode = #tpu.pipeline_mode<synchronous>, transform_indices = @transform_4, window_bounds = array<i64: 384, 128>}, {pipeline_mode = #tpu.pipeline_mode<synchronous>, transform_indices = @transform_5, window_bounds = array<i64: 4, 128>}, {pipeline_mode = #tpu.pipeline_mode<synchronous>, transform_indices = @transform_6, window_bounds = array<i64: 128, 128>}, {pipeline_mode = #tpu.pipeline_mode<synchronous>, transform_indices = @transform_7, window_bounds = array<i64: 128, 1>}, {pipeline_mode = #tpu.pipeline_mode<synchronous>, transform_indices = @transform_8, window_bounds = array<i64: 1, 1>}, {pipeline_mode = #tpu.pipeline_mode<synchronous>, transform_indices = @transform_9, window_bounds = array<i64: 256, 384>}, {pipeline_mode = #tpu.pipeline_mode<synchronous>, transform_indices = @transform_10, window_bounds = array<i64: 2, 384>}, {pipeline_mode = #tpu.pipeline_mode<synchronous>, transform_indices = @transform_11, window_bounds = array<i64: 16, 128>}]} {
    %c0_i32 = arith.constant 0 : i32
    %0 = arith.cmpi eq, %arg0, %c0_i32 : i32
    %1 = arith.extui %0 : i1 to i32
    %c0_i32_0 = arith.constant 0 : i32
    %2 = arith.cmpi ne, %1, %c0_i32_0 : i32
    scf.if %2 {
      %cst_39 = arith.constant 0.000000e+00 : f32
      %77 = vector.broadcast %cst_39 : f32 to vector<16x128xf32>
      %c0_40 = arith.constant 0 : index
      %c0_41 = arith.constant 0 : index
      %78 = vector.load %arg13[%c0_40, %c0_41] : memref<16x128xf32, #tpu.memory_space<vmem>>, vector<16x128xf32>
      tpu.vector_store %arg13[%c0_40, %c0_41], %77 {strides = array<i32>} : memref<16x128xf32, #tpu.memory_space<vmem>>, vector<16x128xf32>,
    } else {
    }
    %c0 = arith.constant 0 : index
    %c0_1 = arith.constant 0 : index
    %3 = vector.load %arg4[%c0, %c0_1] : memref<16x128xf32, #tpu.memory_space<vmem>>, vector<16x128xf32>
    %c0_2 = arith.constant 0 : index
    %c0_3 = arith.constant 0 : index
    %4 = vector.load %arg3[%c0_2, %c0_3] : memref<8x128xf32, #tpu.memory_space<vmem>>, vector<8x128xf32>
    %5 = tpu.iota {dimensions = array<i32: 1>} : vector<8x16xi32>
    %c0_4 = arith.constant 0 : index
    %c0_5 = arith.constant 0 : index
    %6 = vector.load %arg1[%c0_4, %c0_5] : memref<8x1xi32, #tpu.memory_space<vmem>>, vector<8x1xi32>
    %7 = vector.broadcast %6 : vector<8x1xi32> to vector<8x16xi32>
    %8 = arith.cmpi eq, %5, %7 : vector<8x16xi32>
    %9 = arith.extui %8 : vector<8x16xi1> to vector<8x16xi32>
    %10 = arith.sitofp %9 : vector<8x16xi32> to vector<8x16xf32>
    %c0_6 = arith.constant 0 : index
    %c0_7 = arith.constant 0 : index
    %11 = vector.load %arg2[%c0_6, %c0_7] : memref<8x1xi32, #tpu.memory_space<vmem>>, vector<8x1xi32>
    %12 = vector.broadcast %11 : vector<8x1xi32> to vector<8x16xi32>
    %13 = arith.cmpi eq, %5, %12 : vector<8x16xi32>
    %14 = arith.extui %13 : vector<8x16xi1> to vector<8x16xi32>
    %15 = arith.sitofp %14 : vector<8x16xi32> to vector<8x16xf32>
    %cst = arith.constant dense<0.000000e+00> : vector<8x128xf32>
    %16 = tpu.matmul %10, %3, %cst {dimension_numbers = #tpu.dot_dimension_numbers<[1], [0], [0], [1], [0, 0, 1, 1], [], []>} : vector<8x16xf32>, vector<16x128xf32>, vector<8x128xf32> -> vector<8x128xf32>
    %cst_8 = arith.constant dense<0.000000e+00> : vector<8x128xf32>
    %17 = tpu.matmul %15, %3, %cst_8 {dimension_numbers = #tpu.dot_dimension_numbers<[1], [0], [0], [1], [0, 0, 1, 1], [], []>} : vector<8x16xf32>, vector<16x128xf32>, vector<8x128xf32> -> vector<8x128xf32>
    %18 = tpu.concatenate %16, %17, %4 in 1 : vector<8x128xf32>, vector<8x128xf32>, vector<8x128xf32> -> vector<8x384xf32>
    %c0_9 = arith.constant 0 : index
    %c0_10 = arith.constant 0 : index
    %19 = vector.load %arg5[%c0_9, %c0_10] : memref<384x128xf32, #tpu.memory_space<vmem>>, vector<384x128xf32>
    %cst_11 = arith.constant dense<0.000000e+00> : vector<8x128xf32>
    %20 = tpu.matmul %18, %19, %cst_11 {dimension_numbers = #tpu.dot_dimension_numbers<[1], [0], [0], [1], [0, 0, 1, 1], [], []>} : vector<8x384xf32>, vector<384x128xf32>, vector<8x128xf32> -> vector<8x128xf32>
    %c0_12 = arith.constant 0 : index
    %c0_13 = arith.constant 0 : index
    %21 = vector.load %arg6[%c0_12, %c0_13] : memref<4x128xf32, #tpu.memory_space<vmem>>, vector<1x128xf32>
    %22 = vector.broadcast %21 : vector<1x128xf32> to vector<8x128xf32>
    %23 = arith.addf %20, %22 : vector<8x128xf32>
    %cst_14 = arith.constant dense<0.000000e+00> : vector<8xf32>
    %24 = vector.multi_reduction <add>, %23, %cst_14 [1] : vector<8x128xf32> to vector<8xf32>
    %25 = vector.shape_cast %24 : vector<8xf32> to vector<8x1xf32>
    %cst_15 = arith.constant 3.125000e-02 : f32
    %26 = vector.broadcast %cst_15 : f32 to vector<8x1xf32>
    %27 = arith.mulf %25, %26 : vector<8x1xf32>
    %28 = vector.broadcast %27 : vector<8x1xf32> to vector<8x128xf32>
    %29 = arith.subf %23, %28 : vector<8x128xf32>
    %30 = tpu.iota {dimensions = array<i32: 1>} : vector<8x128xi32>
    %c32_i32 = arith.constant 32 : i32
    %31 = vector.broadcast %c32_i32 : i32 to vector<8x128xi32>
    %32 = arith.cmpi slt, %30, %31 : vector<8x128xi32>
    %33 = arith.mulf %29, %29 : vector<8x128xf32>
    %cst_16 = arith.constant 0.000000e+00 : f32
    %34 = vector.broadcast %cst_16 : f32 to vector<8x128xf32>
    %35 = arith.select %32, %33, %34 : vector<8x128xi1>, vector<8x128xf32>
    %cst_17 = arith.constant dense<0.000000e+00> : vector<8xf32>
    %36 = vector.multi_reduction <add>, %35, %cst_17 [1] : vector<8x128xf32> to vector<8xf32>
    %37 = vector.shape_cast %36 : vector<8xf32> to vector<8x1xf32>
    %cst_18 = arith.constant 3.125000e-02 : f32
    %38 = vector.broadcast %cst_18 : f32 to vector<8x1xf32>
    %39 = arith.mulf %37, %38 : vector<8x1xf32>
    %cst_19 = arith.constant 9.99999974E-6 : f32
    %40 = vector.broadcast %cst_19 : f32 to vector<8x1xf32>
    %41 = arith.addf %39, %40 : vector<8x1xf32>
    %42 = math.rsqrt %41 : vector<8x1xf32>
    %43 = vector.broadcast %42 : vector<8x1xf32> to vector<8x128xf32>
    %44 = arith.mulf %29, %43 : vector<8x128xf32>
    %c1 = arith.constant 1 : index
    %c0_20 = arith.constant 0 : index
    %45 = vector.load %arg6[%c1, %c0_20] : memref<4x128xf32, #tpu.memory_space<vmem>>, vector<1x128xf32>
    %46 = vector.broadcast %45 : vector<1x128xf32> to vector<8x128xf32>
    %47 = arith.mulf %44, %46 : vector<8x128xf32>
    %c2 = arith.constant 2 : index
    %c0_21 = arith.constant 0 : index
    %48 = vector.load %arg6[%c2, %c0_21] : memref<4x128xf32, #tpu.memory_space<vmem>>, vector<1x128xf32>
    %49 = vector.broadcast %48 : vector<1x128xf32> to vector<8x128xf32>
    %50 = arith.addf %47, %49 : vector<8x128xf32>
    %cst_22 = arith.constant 0.000000e+00 : f32
    %51 = vector.broadcast %cst_22 : f32 to vector<8x128xf32>
    %52 = arith.maximumf %50, %51 : vector<8x128xf32>
    %c0_23 = arith.constant 0 : index
    %c0_24 = arith.constant 0 : index
    %53 = vector.load %arg7[%c0_23, %c0_24] : memref<128x128xf32, #tpu.memory_space<vmem>>, vector<128x128xf32>
    %cst_25 = arith.constant dense<0.000000e+00> : vector<8x128xf32>
    %54 = tpu.matmul %52, %53, %cst_25 {dimension_numbers = #tpu.dot_dimension_numbers<[1], [0], [0], [1], [0, 0, 1, 1], [], []>} : vector<8x128xf32>, vector<128x128xf32>, vector<8x128xf32> -> vector<8x128xf32>
    %c3 = arith.constant 3 : index
    %c0_26 = arith.constant 0 : index
    %55 = vector.load %arg6[%c3, %c0_26] : memref<4x128xf32, #tpu.memory_space<vmem>>, vector<1x128xf32>
    %56 = vector.broadcast %55 : vector<1x128xf32> to vector<8x128xf32>
    %57 = arith.addf %54, %56 : vector<8x128xf32>
    %c0_27 = arith.constant 0 : index
    %c0_28 = arith.constant 0 : index
    %58 = vector.load %arg8[%c0_27, %c0_28] : memref<128x1xf32, #tpu.memory_space<vmem>>, vector<128x1xf32>
    %cst_29 = arith.constant dense<0.000000e+00> : vector<8x1xf32>
    %59 = tpu.matmul %4, %58, %cst_29 {dimension_numbers = #tpu.dot_dimension_numbers<[1], [0], [0], [1], [0, 0, 1, 1], [], []>} : vector<8x128xf32>, vector<128x1xf32>, vector<8x1xf32> -> vector<8x1xf32>
    %c0_30 = arith.constant 0 : index
    %c0_31 = arith.constant 0 : index
    %60 = vector.load %arg9[%c0_30, %c0_31] : memref<1x1xf32, #tpu.memory_space<vmem>>, vector<1x1xf32>
    %61 = vector.broadcast %60 : vector<1x1xf32> to vector<8x1xf32>
    %62 = arith.addf %59, %61 : vector<8x1xf32>
    %63 = arith.negf %62 : vector<8x1xf32>
    %64 = math.exp %63 : vector<8x1xf32>
    %cst_32 = arith.constant 1.000000e+00 : f32
    %65 = vector.broadcast %cst_32 : f32 to vector<8x1xf32>
    %66 = arith.addf %65, %64 : vector<8x1xf32>
    %67 = arith.divf %65, %66 : vector<8x1xf32>
    %68 = vector.broadcast %67 : vector<8x1xf32> to vector<8x128xf32>
    %69 = arith.mulf %57, %68 : vector<8x128xf32>
    %c0_33 = arith.constant 0 : index
    %c0_34 = arith.constant 0 : index
    %70 = vector.load %arg13[%c0_33, %c0_34] : memref<16x128xf32, #tpu.memory_space<vmem>>, vector<16x128xf32>
    %cst_35 = arith.constant dense<0.000000e+00> : vector<16x128xf32>
    %71 = tpu.matmul %15, %69, %cst_35 {dimension_numbers = #tpu.dot_dimension_numbers<[0], [0], [1], [1], [0, 1, 1, 1], [], []>} : vector<8x16xf32>, vector<8x128xf32>, vector<16x128xf32> -> vector<16x128xf32>
    %72 = arith.addf %70, %71 : vector<16x128xf32>
    %c0_36 = arith.constant 0 : index
    %c0_37 = arith.constant 0 : index
    %73 = vector.load %arg13[%c0_36, %c0_37] : memref<16x128xf32, #tpu.memory_space<vmem>>, vector<16x128xf32>
    tpu.vector_store %arg13[%c0_36, %c0_37], %72 {strides = array<i32>} : memref<16x128xf32, #tpu.memory_space<vmem>>, vector<16x128xf32>,
    %c2_i32 = arith.constant 2 : i32
    %74 = arith.cmpi eq, %arg0, %c2_i32 : i32
    %75 = arith.extui %74 : i1 to i32
    %c0_i32_38 = arith.constant 0 : i32
    %76 = arith.cmpi ne, %75, %c0_i32_38 : i32
    scf.if %76 {
      %c0_39 = arith.constant 0 : index
      %c0_40 = arith.constant 0 : index
      %77 = vector.load %arg13[%c0_39, %c0_40] : memref<16x128xf32, #tpu.memory_space<vmem>>, vector<16x128xf32>
      %78 = tpu.concatenate %77, %3 in 1 : vector<16x128xf32>, vector<16x128xf32> -> vector<16x256xf32>
      %c0_41 = arith.constant 0 : index
      %c0_42 = arith.constant 0 : index
      %79 = vector.load %arg10[%c0_41, %c0_42] : memref<256x384xf32, #tpu.memory_space<vmem>>, vector<256x256xf32>
      %cst_43 = arith.constant dense<0.000000e+00> : vector<16x256xf32>
      %80 = tpu.matmul %78, %79, %cst_43 {dimension_numbers = #tpu.dot_dimension_numbers<[1], [0], [0], [1], [0, 0, 1, 1], [], []>} : vector<16x256xf32>, vector<256x256xf32>, vector<16x256xf32> -> vector<16x256xf32>
      %c0_44 = arith.constant 0 : index
      %c0_45 = arith.constant 0 : index
      %81 = vector.load %arg11[%c0_44, %c0_45] : memref<2x384xf32, #tpu.memory_space<vmem>>, vector<1x256xf32>
      %82 = vector.broadcast %81 : vector<1x256xf32> to vector<16x256xf32>
      %83 = arith.addf %80, %82 : vector<16x256xf32>
      %c1_46 = arith.constant 1 : index
      %c0_47 = arith.constant 0 : index
      %84 = vector.load %arg11[%c1_46, %c0_47] : memref<2x384xf32, #tpu.memory_space<vmem>>, vector<1x256xf32>
      %85 = vector.broadcast %84 : vector<1x256xf32> to vector<16x256xf32>
      %86 = arith.addf %83, %85 : vector<16x256xf32>
      %87 = arith.negf %86 : vector<16x256xf32>
      %88 = math.exp %87 : vector<16x256xf32>
      %cst_48 = arith.constant 1.000000e+00 : f32
      %89 = vector.broadcast %cst_48 : f32 to vector<16x256xf32>
      %90 = arith.addf %89, %88 : vector<16x256xf32>
      %91 = arith.divf %89, %90 : vector<16x256xf32>
      %92 = vector.extract_strided_slice %91 {offsets = [0, 0], sizes = [16, 128], strides = [1, 1]} : vector<16x256xf32> to vector<16x128xf32>
      %93 = vector.extract_strided_slice %91 {offsets = [0, 128], sizes = [16, 128], strides = [1, 1]} : vector<16x256xf32> to vector<16x128xf32>
      %c0_49 = arith.constant 0 : index
      %c256 = arith.constant 256 : index
      %94 = vector.load %arg10[%c0_49, %c256] : memref<256x384xf32, #tpu.memory_space<vmem>>, vector<128x128xf32>
      %cst_50 = arith.constant dense<0.000000e+00> : vector<16x128xf32>
      %95 = tpu.matmul %77, %94, %cst_50 {dimension_numbers = #tpu.dot_dimension_numbers<[1], [0], [0], [1], [0, 0, 1, 1], [], []>} : vector<16x128xf32>, vector<128x128xf32>, vector<16x128xf32> -> vector<16x128xf32>
      %c0_51 = arith.constant 0 : index
      %c256_52 = arith.constant 256 : index
      %96 = vector.load %arg11[%c0_51, %c256_52] : memref<2x384xf32, #tpu.memory_space<vmem>>, vector<1x128xf32>
      %97 = vector.broadcast %96 : vector<1x128xf32> to vector<16x128xf32>
      %98 = arith.addf %95, %97 : vector<16x128xf32>
      %c128 = arith.constant 128 : index
      %c256_53 = arith.constant 256 : index
      %99 = vector.load %arg10[%c128, %c256_53] : memref<256x384xf32, #tpu.memory_space<vmem>>, vector<128x128xf32>
      %cst_54 = arith.constant dense<0.000000e+00> : vector<16x128xf32>
      %100 = tpu.matmul %3, %99, %cst_54 {dimension_numbers = #tpu.dot_dimension_numbers<[1], [0], [0], [1], [0, 0, 1, 1], [], []>} : vector<16x128xf32>, vector<128x128xf32>, vector<16x128xf32> -> vector<16x128xf32>
      %c1_55 = arith.constant 1 : index
      %c256_56 = arith.constant 256 : index
      %101 = vector.load %arg11[%c1_55, %c256_56] : memref<2x384xf32, #tpu.memory_space<vmem>>, vector<1x128xf32>
      %102 = vector.broadcast %101 : vector<1x128xf32> to vector<16x128xf32>
      %103 = arith.addf %100, %102 : vector<16x128xf32>
      %104 = arith.mulf %92, %103 : vector<16x128xf32>
      %105 = arith.addf %98, %104 : vector<16x128xf32>
      %106 = math.tanh %105 : vector<16x128xf32>
      %cst_57 = arith.constant 1.000000e+00 : f32
      %107 = vector.broadcast %cst_57 : f32 to vector<16x128xf32>
      %108 = arith.subf %107, %93 : vector<16x128xf32>
      %109 = arith.mulf %108, %106 : vector<16x128xf32>
      %110 = arith.mulf %93, %3 : vector<16x128xf32>
      %111 = arith.addf %109, %110 : vector<16x128xf32>
      %c0_58 = arith.constant 0 : index
      %c0_59 = arith.constant 0 : index
      %112 = vector.load %arg12[%c0_58, %c0_59] : memref<16x128xf32, #tpu.memory_space<vmem>>, vector<16x128xf32>
      tpu.vector_store %arg12[%c0_58, %c0_59], %111 {strides = array<i32>} : memref<16x128xf32, #tpu.memory_space<vmem>>, vector<16x128xf32>,
    } else {
    }
    return
  }
  func.func @transform_0(%arg0: i32) -> (i32, i32) {
    %c0_i32 = arith.constant 0 : i32
    %c0_i32_0 = arith.constant 0 : i32
    return %arg0, %c0_i32 : i32, i32
  }
  func.func @transform_1(%arg0: i32) -> (i32, i32) {
    %c0_i32 = arith.constant 0 : i32
    %c0_i32_0 = arith.constant 0 : i32
    return %arg0, %c0_i32 : i32, i32
  }
  func.func @transform_2(%arg0: i32) -> (i32, i32) {
    %c0_i32 = arith.constant 0 : i32
    %c0_i32_0 = arith.constant 0 : i32
    return %arg0, %c0_i32 : i32, i32
  }
  func.func @transform_3(%arg0: i32) -> (i32, i32) {
    %c0_i32 = arith.constant 0 : i32
    %c0_i32_0 = arith.constant 0 : i32
    %c0_i32_1 = arith.constant 0 : i32
    return %c0_i32, %c0_i32_0 : i32, i32
  }
  func.func @transform_4(%arg0: i32) -> (i32, i32) {
    %c0_i32 = arith.constant 0 : i32
    %c0_i32_0 = arith.constant 0 : i32
    %c0_i32_1 = arith.constant 0 : i32
    return %c0_i32, %c0_i32_0 : i32, i32
  }
  func.func @transform_5(%arg0: i32) -> (i32, i32) {
    %c0_i32 = arith.constant 0 : i32
    %c0_i32_0 = arith.constant 0 : i32
    %c0_i32_1 = arith.constant 0 : i32
    return %c0_i32, %c0_i32_0 : i32, i32
  }
  func.func @transform_6(%arg0: i32) -> (i32, i32) {
    %c0_i32 = arith.constant 0 : i32
    %c0_i32_0 = arith.constant 0 : i32
    %c0_i32_1 = arith.constant 0 : i32
    return %c0_i32, %c0_i32_0 : i32, i32
  }
  func.func @transform_7(%arg0: i32) -> (i32, i32) {
    %c0_i32 = arith.constant 0 : i32
    %c0_i32_0 = arith.constant 0 : i32
    %c0_i32_1 = arith.constant 0 : i32
    return %c0_i32, %c0_i32_0 : i32, i32
  }
  func.func @transform_8(%arg0: i32) -> (i32, i32) {
    %c0_i32 = arith.constant 0 : i32
    %c0_i32_0 = arith.constant 0 : i32
    %c0_i32_1 = arith.constant 0 : i32
    return %c0_i32, %c0_i32_0 : i32, i32
  }
  func.func @transform_9(%arg0: i32) -> (i32, i32) {
    %c0_i32 = arith.constant 0 : i32
    %c0_i32_0 = arith.constant 0 : i32
    %c0_i32_1 = arith.constant 0 : i32
    return %c0_i32, %c0_i32_0 : i32, i32
  }
  func.func @transform_10(%arg0: i32) -> (i32, i32) {
    %c0_i32 = arith.constant 0 : i32
    %c0_i32_0 = arith.constant 0 : i32
    %c0_i32_1 = arith.constant 0 : i32
    return %c0_i32, %c0_i32_0 : i32, i32
  }
  func.func @transform_11(%arg0: i32) -> (i32, i32) {
    %c0_i32 = arith.constant 0 : i32
    %c0_i32_0 = arith.constant 0 : i32
    %c0_i32_1 = arith.constant 0 : i32
    return %c0_i32, %c0_i32_0 : i32, i32
  }
}

</mosaic_0001>

<bundles_post_ra>
// kernel: tpu_custom_call.1
= control target key start
LH: loop header
LB: loop body
LE: loop exit
PB: predicated region body
PF: predicated region fallthrough
CT: control target
= control target key end

     0   :  { %s1838_s0 = inlined_call_operand.vmem [shape: s32[24,1], index: 0, kind: input, shape index: {}]   ;;  %s1839_s1 = inlined_call_operand.vmem [shape: s32[24,1], index: 1, kind: input, shape index: {}]   ;;  %s1840_s2 = inlined_call_operand.vmem [shape: f32[24,128], index: 2, kind: input, shape index: {}]   ;;  %s1841_s3 = inlined_call_operand.vmem [shape: f32[16,128], index: 3, kind: input, shape index: {}]   ;;  %s1842_s4 = inlined_call_operand.hbm [shape: f32[384,128], index: 4, kind: input, shape index: {}]   ;;  %s1843_s5 = inlined_call_operand.vmem [shape: f32[4,128], index: 5, kind: input, shape index: {}]   ;;  %s1844_s6 = inlined_call_operand.vmem [shape: f32[128,128], index: 6, kind: input, shape index: {}]   ;;  %s1845_s7 = inlined_call_operand.vmem [shape: f32[128,1], index: 7, kind: input, shape index: {}]   ;;  %s1846_s8 = inlined_call_operand.<no memory space> [shape: f32[1,1], index: 8, kind: input, shape index: {}]   ;;  %s1847_s9 = inlined_call_operand.hbm [shape: f32[256,384], index: 9, kind: input, shape index: {}]   ;;  %s1848_s10 = inlined_call_operand.vmem [shape: f32[2,384], index: 10, kind: input, shape index: {}]   ;;  %s1849_s11 = inlined_call_operand.hbm [shape: f32[16,128], index: 11, kind: output, shape index: {}]  }
   0x1   :  { %v16_v0 = vstv %s1846_s8 }
   0x2   :  { %17 = vst [vmem:[#allocation3] sm:$0x1] %v16_v0 }
   0x3   :  { %18 = vsyncpa [#allocation5], 0 }
   0x4   :  { %19 = vsyncpa [#allocation8], 0 }
   0x5   :  { %20 = vsyncpa [#allocation6], 0  ;;  %s1595_s19 = smov 0  }
   0x6 LB: > { %s312_s22 = sshll.u32 %s1842_s4, 4  ;;  %s1604_s8 = sadd.s32 4294967295, %s1518_s19   ;;  %s1518_s19 = sphi %s1595_s19, %s26_s19   ;;  %s313_s22 = int_to_ptr.hbm [resolvable:$true] %s312_s22 }
   0x7   : > { %p1272_p0 = scmp.ge.s32.totalorder %s1518_s19, 1  ;;  %p298_p1 = scmp.lt.s32.totalorder %s1518_s19, 4 }
   0x8   : > { %p1273_p2 = scmp.ne.s32.totalorder %s1604_s8, 0  ;;  %p1351_p3 = scmp.eq.s32.totalorder %s1604_s8, 0 }
   0x9   : > { %p1610_p4 = pnand %p1272_p0, %p298_p1  ;;  %s1520_s24 = smov [#allocation4]  }
   0xa   : > { %s314_s25 = sshll.u32 %s1520_s24, 4  ;;  %s338_s28 = sshll.u32 %s1847_s9, 4  ;;  %s315_s25 = int_to_ptr.vmem [resolvable:$true] %s314_s25  ;;  %s339_s28 = int_to_ptr.hbm [resolvable:$true] %s338_s28 }
   0xb   : > { %p1344_p5 = pneg %p1610_p4  ;;  %s1521_s29 = smov [#allocation7]  }
   0xc   : > { %s340_s30 = sshll.u32 %s1521_s29, 4  ;;  %s1522_s12 = smov 128   ;;  %s341_s30 = int_to_ptr.vmem [resolvable:$true] %s340_s30 }
   0xd   : > { %p1345_p6 = pnand %p1351_p3, %p1344_p5  ;;  %s1523_s13 = smov 8  }
   0xe   : > { %s1524_s14 = smov 384   ;;  %s1525_s15 = smov 24  }
   0xf   : > { %1347 = dma.hbm_to_vmem [thread:$0]  (!%p1345_p6), %s313_s22, 6144, %s315_s25, [#allocation5], %s1522_s12, %s1522_s12, %s1523_s13  }
  0x10   : > { %1350 = dma.hbm_to_vmem [thread:$0]  (!%p1345_p6), %s339_s28, 12288, %s341_s30, [#allocation8], %s1524_s14, %s1524_s14, %s1525_s15  }
  0x11   : > { %380 = sbr.rel (%p1610_p4) target bundleno = 1194 (0x4aa), region = 64 }
  0x16   : > { %1505 = dma.done.wait (%p1351_p3), [#allocation5], 6144  }
  0x17   : > { %1507 = vsyncadd (%p1351_p3), [#allocation5], 4294961152 }
  0x18   : > { %1509 = dma.done.wait (%p1351_p3), [#allocation8], 12288  }
  0x19   : > { %1511 = vsyncadd (%p1351_p3), [#allocation8], 4294955008  ;;  %p428_p7 = scmp.lt.s32.totalorder %s1604_s8, 2 }
  0x1b   : > { %s429_s16 = scalar_select %p428_p7, %s1604_s8, 2 }
  0x1c   : > { %443 = sbr.rel (%p1273_p2) target bundleno = 36 (0x24), region = 76 }
  0x1d   : > { %s1633_s17 = sshll.u32 %s429_s16, 3 }
  0x1e   : > { %s431_s21 = scalar_lea.vmem %s1838_s0, %s1633_s17  ;;  %s435_s24 = scalar_lea.vmem %s1839_s1, %s1633_s17 }
  0x1f   : > { %s439_s27 = scalar_lea.vmem %s1840_s2, %s1633_s17 }
  0x21   : > { %v1526_v1 = vmov 0.0  }
  0x22   : > { %444 = vst [vmem:[#allocation2] sm:$0xff] %v1526_v1 }
  0x23   : > { %445 = vst [vmem:[#allocation2 + $0x8] sm:$0xff] %v1526_v1 }
  0x24 PF: > { %v451_v2 = vld [vmem:[%s431_s21] sm:$0xff]  ;;  %v1527_v3 = vmov 0   ;;  %v1652_v5 = vld [vmem:[%s1841_s3 + $0x8] sm:$0xff]  ;;  %v524_v10 = vld [vmem:[#allocation4 + $0x60] sm:$0xff]  ;;  %v449_v25 = vlaneseq  ;;  %vm465_vm0 = vcmask 130048   ;;  %v1528_v40 = vmov 0.0  }
  0x25   : > { %1377 = vset.pattern.permute.xlu0 %v1527_v3  ;;  %1378 = vset.pattern.permute.xlu2 %v1527_v3  ;;  %v458_v4 = vld [vmem:[%s435_s24] sm:$0xff]  ;;  %v527_v7 = vld [vmem:[#allocation4 + $0x78] sm:$0xff]  ;;  %v540_v17 = vld [vmem:[#allocation4 + $0xe0] sm:$0xff]  ;;  %vm788_vm11 = vcmask 64512   ;;  %p1290_p8 = scmp.ne.s32.totalorder %s1604_s8, 2 }
  0x26   : > { %453 = vperm.xlu0 %1377, %v451_v2   ;;  %483 = vmatpush.msra.mxu0 %v1652_v5  ;;  %v1659_v6 = vld [vmem:[%s1841_s3] sm:$0xff]  ;;  %v543_v11 = vld [vmem:[#allocation4 + $0xf8] sm:$0xff]  ;;  %v520_v22 = vld [vmem:[#allocation4 + $0x40] sm:$0xff]  ;;  %v1663_v32 = vand.u32 127, %v449_v25 }
  0x27   : > { %506 = vmatpush.msra.mxu1 %v1652_v5  ;;  %v526_v8 = vld [vmem:[#allocation4 + $0x70] sm:$0xff]  ;;  %562 = vmatpush.msra.mxu2 %v527_v7  ;;  %v525_v9 = vld [vmem:[#allocation4 + $0x68] sm:$0xff]  ;;  %v523_v12 = vld [vmem:[#allocation4 + $0x58] sm:$0xff] }
  0x28   : > { %484 = vmatpush.msra.mxu0 %v1659_v6  ;;  %582 = vmatpush.msra.mxu3 %v543_v11  ;;  %v542_v13 = vld [vmem:[#allocation4 + $0xf0] sm:$0xff]  ;;  %v541_v14 = vld [vmem:[#allocation4 + $0xe8] sm:$0xff]  ;;  %v559_v16 = vld [vmem:[#allocation4 + $0x178] sm:$0xff]  ;;  %vm626_vm7 = vcmp.lt.s32.totalorder %v1663_v32, 32 }
  0x29   : > { %507 = vmatpush.msra.mxu1 %v1659_v6  ;;  %563 = vmatpush.msra.mxu2 %v526_v8  ;;  %v522_v15 = vld [vmem:[#allocation4 + $0x50] sm:$0xff]  ;;  %v521_v19 = vld [vmem:[#allocation4 + $0x48] sm:$0xff]  ;;  %v539_v21 = vld [vmem:[#allocation4 + $0xd8] sm:$0xff] }
  0x2a   : > { %583 = vmatpush.msra.mxu3 %v542_v13  ;;  %602 = vmatpush.msrb.mxu0 %v559_v16  ;;  %v558_v18 = vld [vmem:[#allocation4 + $0x170] sm:$0xff]  ;;  %v557_v20 = vld [vmem:[#allocation4 + $0x168] sm:$0xff]  ;;  %v556_v23 = vld [vmem:[#allocation4 + $0x160] sm:$0xff] }
  0x2b   : > { %564 = vmatpush.msra.mxu2 %v525_v9  ;;  %v538_v24 = vld [vmem:[#allocation4 + $0xd0] sm:$0xff]  ;;  %v519_v26 = vld [vmem:[#allocation4 + $0x38] sm:$0xff]  ;;  %v537_v28 = vld [vmem:[#allocation4 + $0xc8] sm:$0xff] }
  0x2c   : > { %584 = vmatpush.msra.mxu3 %v541_v14  ;;  %603 = vmatpush.msrb.mxu0 %v558_v18  ;;  %v555_v27 = vld [vmem:[#allocation4 + $0x158] sm:$0xff]  ;;  %v518_v29 = vld [vmem:[#allocation4 + $0x30] sm:$0xff]  ;;  %v536_v31 = vld [vmem:[#allocation4 + $0xc0] sm:$0xff] }
  0x2d   : > { %565 = vmatpush.msra.mxu2 %v524_v10  ;;  %v554_v30 = vld [vmem:[#allocation4 + $0x150] sm:$0xff]  ;;  %v517_v33 = vld [vmem:[#allocation4 + $0x28] sm:$0xff]  ;;  %v535_v35 = vld [vmem:[#allocation4 + $0xb8] sm:$0xff] }
  0x2e   : > { %460 = vperm.xlu0 %1377, %v458_v4   ;;  %585 = vmatpush.msra.mxu3 %v540_v17  ;;  %v553_v34 = vld [vmem:[#allocation4 + $0x148] sm:$0xff]  ;;  %v516_v36 = vld [vmem:[#allocation4 + $0x20] sm:$0xff]  ;;  %v534_v38 = vld [vmem:[#allocation4 + $0xb0] sm:$0xff] }
  0x2f   : > { %566 = vmatpush.msra.mxu2 %v523_v12  ;;  %604 = vmatpush.msrb.mxu0 %v557_v20  ;;  %v515_v39 = vld [vmem:[#allocation4 + $0x18] sm:$0xff]  ;;  %v533_v42 = vld [vmem:[#allocation4 + $0xa8] sm:$0xff]  ;;  %v514_v43 = vld [vmem:[#allocation4 + $0x10] sm:$0xff] }
  0x30   : > { %586 = vmatpush.msra.mxu3 %v539_v21  ;;  %v513_v44 = vld [vmem:[#allocation4 + $0x8] sm:$0xff]  ;;  %v512_v45 = vld [vmem:[#allocation4] sm:$0xff]  ;;  %v702_v50 = vld [vmem:[%s1845_s7 + $0x68] sm:$0xff] }
  0x31   : > { %567 = vmatpush.msra.mxu2 %v522_v15  ;;  %605 = vmatpush.msrb.mxu0 %v556_v23  ;;  %v704_v47 = vld [vmem:[%s1845_s7 + $0x78] sm:$0xff]  ;;  %v703_v49 = vld [vmem:[%s1845_s7 + $0x70] sm:$0xff]  ;;  %v701_v51 = vld [vmem:[%s1845_s7 + $0x60] sm:$0xff] }
  0x32   : > { %587 = vmatpush.msra.mxu3 %v538_v24  ;;  %v700_v52 = vld [vmem:[%s1845_s7 + $0x58] sm:$0xff]  ;;  %v699_v53 = vld [vmem:[%s1845_s7 + $0x50] sm:$0xff]  ;;  %v698_v54 = vld [vmem:[%s1845_s7 + $0x48] sm:$0xff] }
  0x33   : > { %568 = vmatpush.msra.mxu2 %v521_v19  ;;  %606 = vmatpush.msrb.mxu0 %v555_v27  ;;  %v697_v55 = vld [vmem:[%s1845_s7 + $0x40] sm:$0xff]  ;;  %v696_v56 = vld [vmem:[%s1845_s7 + $0x38] sm:$0xff]  ;;  %v695_v57 = vld [vmem:[%s1845_s7 + $0x30] sm:$0xff] }
  0x34   : > { %588 = vmatpush.msra.mxu3 %v537_v28  ;;  %v694_v58 = vld [vmem:[%s1845_s7 + $0x28] sm:$0xff]  ;;  %v532_v59 = vld [vmem:[#allocation4 + $0xa0] sm:$0xff]  ;;  %v693_v61 = vld [vmem:[%s1845_s7 + $0x20] sm:$0xff] }
  0x35   : > { %569 = vmatpush.msra.mxu2 %v520_v22  ;;  %607 = vmatpush.msrb.mxu0 %v554_v30  ;;  %v552_v60 = vld [vmem:[#allocation4 + $0x140] sm:$0xff]  ;;  %v531_v62 = vld [vmem:[#allocation4 + $0x98] sm:$0xff]  ;;  %v530_v1 = vld [vmem:[#allocation4 + $0x90] sm:$0xff] }
  0x36   : > { %589 = vmatpush.msra.mxu3 %v536_v31  ;;  %v551_v63 = vld [vmem:[#allocation4 + $0x138] sm:$0xff]  ;;  %v692_v0 = vld [vmem:[%s1845_s7 + $0x18] sm:$0xff]  ;;  %v550_v2 = vld [vmem:[#allocation4 + $0x130] sm:$0xff] }
  0x37   : > { %570 = vmatpush.msra.mxu2 %v519_v26  ;;  %608 = vmatpush.msrb.mxu0 %v553_v34  ;;  %v691_v3 = vld [vmem:[%s1845_s7 + $0x10] sm:$0xff]  ;;  %v529_v4 = vld [vmem:[#allocation4 + $0x88] sm:$0xff]  ;;  %v690_v8 = vld [vmem:[%s1845_s7 + $0x8] sm:$0xff] }
  0x38   : > { %590 = vmatpush.msra.mxu3 %v535_v35  ;;  %v549_v7 = vld [vmem:[#allocation4 + $0x128] sm:$0xff]  ;;  %v528_v9 = vld [vmem:[#allocation4 + $0x80] sm:$0xff]  ;;  %v547_v12 = vld [vmem:[#allocation4 + $0x118] sm:$0xff] }
  0x39   : > { %571 = vmatpush.msra.mxu2 %v518_v29  ;;  %609 = vmatpush.msrb.mxu0 %v552_v60  ;;  %v548_v10 = vld [vmem:[#allocation4 + $0x120] sm:$0xff]  ;;  %v689_v11 = vld [vmem:[%s1845_s7] sm:$0xff]  ;;  %v1380_v21 = vld [vmem:[#allocation3] ss:$0 sm:$0xff] }
  0x3a   : > { %591 = vmatpush.msra.mxu3 %v534_v38  ;;  %v546_v13 = vld [vmem:[#allocation4 + $0x110] sm:$0xff]  ;;  %v545_v14 = vld [vmem:[#allocation4 + $0x108] sm:$0xff]  ;;  %v544_v15 = vld [vmem:[#allocation4 + $0x100] sm:$0xff] }
  0x3b   : > { %572 = vmatpush.msra.mxu2 %v517_v33  ;;  %610 = vmatpush.msrb.mxu0 %v551_v63  ;;  %v448_v16 = vld [vmem:[%s439_s27] sm:$0xff]  ;;  %v653_v60 = vld [vmem:[%s1844_s6 + $0x10] sm:$0xff] }
  0x3c   : > { %592 = vmatpush.msra.mxu3 %v533_v42  ;;  %v1379_v20 = vld [vmem:[%s1843_s5] ss:$0 sm:$0xff] }
  0x3d   : > { %573 = vmatpush.msra.mxu2 %v516_v36  ;;  %611 = vmatpush.msrb.mxu0 %v550_v2 }
  0x3e   : > { %593 = vmatpush.msra.mxu3 %v532_v59  ;;  %v654_v59 = vld [vmem:[%s1844_s6 + $0x18] sm:$0xff] }
  0x3f   : > { %574 = vmatpush.msra.mxu2 %v515_v39  ;;  %612 = vmatpush.msrb.mxu0 %v549_v7 }
  0x40   : > { %594 = vmatpush.msra.mxu3 %v531_v62  ;;  %v651_v62 = vld [vmem:[%s1844_s6] sm:$0xff] }
  0x41   : > { %575 = vmatpush.msra.mxu2 %v514_v43  ;;  %613 = vmatpush.msrb.mxu0 %v548_v10  ;;  %v666_v43 = vld [vmem:[%s1844_s6 + $0x78] sm:$0xff]  ;;  %v1381_v10 = vld [vmem:[%s1843_s5 + $0x1] ss:$0 sm:$0xff] }
  0x42   : > { %595 = vmatpush.msra.mxu3 %v530_v1  ;;  %669 = vmatpush.msrb.mxu1 %v666_v43 }
  0x43   : > { %576 = vmatpush.msra.mxu2 %v513_v44  ;;  %614 = vmatpush.msrb.mxu0 %v547_v12 }
  0x44   : > { %596 = vmatpush.msra.mxu3 %v529_v4 }
  0x45   : > { %577 = vmatpush.msra.mxu2 %v512_v45  ;;  %615 = vmatpush.msrb.mxu0 %v546_v13  ;;  %v1382_v13 = vld [vmem:[%s1843_s5 + $0x2] ss:$0 sm:$0xff] }
  0x46   : > { %597 = vmatpush.msra.mxu3 %v528_v9 }
  0x47   : > { %709 = vmatpush.msrb.mxu2 %v704_v47  ;;  %616 = vmatpush.msrb.mxu0 %v545_v14 }
  0x49   : > { %710 = vmatpush.msrb.mxu2 %v703_v49  ;;  %617 = vmatpush.msrb.mxu0 %v544_v15 }
  0x4b   : > { %711 = vmatpush.msrb.mxu2 %v702_v50  ;;  %v665_v50 = vld [vmem:[%s1844_s6 + $0x70] sm:$0xff] }
  0x4c   : > { %670 = vmatpush.msrb.mxu1 %v665_v50 }
  0x4d   : > { %712 = vmatpush.msrb.mxu2 %v701_v51  ;;  %v663_v51 = vld [vmem:[%s1844_s6 + $0x60] sm:$0xff] }
  0x4f   : > { %713 = vmatpush.msrb.mxu2 %v700_v52  ;;  %v661_v52 = vld [vmem:[%s1844_s6 + $0x50] sm:$0xff] }
  0x51   : > { %714 = vmatpush.msrb.mxu2 %v699_v53  ;;  %v660_v53 = vld [vmem:[%s1844_s6 + $0x48] sm:$0xff] }
  0x53   : > { %715 = vmatpush.msrb.mxu2 %v698_v54  ;;  %v659_v54 = vld [vmem:[%s1844_s6 + $0x40] sm:$0xff] }
  0x55   : > { %716 = vmatpush.msrb.mxu2 %v697_v55  ;;  %v658_v55 = vld [vmem:[%s1844_s6 + $0x38] sm:$0xff] }
  0x57   : > { %717 = vmatpush.msrb.mxu2 %v696_v56  ;;  %v657_v56 = vld [vmem:[%s1844_s6 + $0x30] sm:$0xff] }
  0x59   : > { %718 = vmatpush.msrb.mxu2 %v695_v57  ;;  %v656_v57 = vld [vmem:[%s1844_s6 + $0x28] sm:$0xff] }
  0x5b   : > { %719 = vmatpush.msrb.mxu2 %v694_v58  ;;  %v655_v58 = vld [vmem:[%s1844_s6 + $0x20] sm:$0xff] }
  0x5d   : > { %720 = vmatpush.msrb.mxu2 %v693_v61  ;;  %v652_v61 = vld [vmem:[%s1844_s6 + $0x8] sm:$0xff] }
  0x5f   : > { %721 = vmatpush.msrb.mxu2 %v692_v0 }
  0x61   : > { %722 = vmatpush.msrb.mxu2 %v691_v3 }
  0x63   : > { %723 = vmatpush.msrb.mxu2 %v690_v8 }
  0x65   : > { %724 = vmatpush.msrb.mxu2 %v689_v11 }
  0x98   : > { %v454_v37 = vpop.permute.xlu0 %453 }
  0x99   : > { %vm455_vm1 = vcmp.eq.s32.totalorder %v1663_v32, %v454_v37 }
  0x9a   : > { %v1283_v41 = vsel %vm455_vm1, 1.0, %v1528_v40 }
  0x9b   : > { %1285 = vmatmul.msk.f32.vlgmr.msra.gmra.mxu0 %vm465_vm0, %v1283_v41 }
  0xa0   : > { %v461_v46 = vpop.permute.xlu0 %460 }
  0xa1   : > { %vm462_vm2 = vcmp.eq.s32.totalorder %v1663_v32, %v461_v46  ;;  %v662_v32 = vld [vmem:[%s1844_s6 + $0x58] sm:$0xff] }
  0xa2   : > { %v1671_v48 = vsel %vm462_vm2, 1.0, %v1528_v40 }
  0xa3   : > { %1286 = vmatmul.msk.f32.vlgmr.msra.gmra.mxu1 %vm465_vm0, %v1671_v48  ;;  %618 = vmatmul.f32.vlgmr.msrb.gmra.mxu0 %v448_v16 }
 0x118   : > { %v486_v17 = vpop.f32.mrf.mxu0 }
 0x119   : > { %578 = vmatmul.f32.vlgmr.msra.gmra.mxu2 %v486_v17 }
 0x120   : > { %v509_v18 = vpop.f32.mrf.mxu1  ;;  %v619_v23 = vpop.f32.mrf.mxu0 }
 0x121   : > { %598 = vmatmul.f32.vlgmr.msra.gmra.mxu3 %v509_v18  ;;  %725 = vmatmul.f32.vlgmr.msrb.gmra.mxu2 %v448_v16  ;;  %v1383_v18 = vld [vmem:[%s1843_s5 + $0x3] ss:$0 sm:$0xff] }
 0x19c   : > { %v579_v19 = vpop.f32.mrf.mxu2 }
 0x19d   : > { %v580_v22 = vadd.f32 %v1379_v20, %v579_v19 }
 0x1a4   : > { %v599_v24 = vpop.f32.mrf.mxu3  ;;  %v726_v25 = vpop.f32.mrf.mxu2 }
 0x1a5   : > { %v600_v26 = vadd.f32 %v599_v24, %v580_v22  ;;  %v727_v27 = vadd.f32 %v1380_v21, %v726_v25  ;;  %v754_v24 = vld [vmem:[#allocation2] sm:$0xff] }
 0x1a7   : > { %v1287_v28 = vmul.f32 -1.442695, %v727_v27  ;;  %v620_v29 = vadd.f32 %v619_v23, %v600_v26  ;;  %v755_v27 = vld [vmem:[#allocation2 + $0x8] sm:$0xff] }
 0x1a9   : > { %1384 = vpow2.f32 %v1287_v28  ;;  %622 = vadd.xlane.f32.xlu1 %v620_v29 }
 0x1af   : > { %v1385_v30 = vpop.eup %1384 }
 0x1b0   : > { %v732_v31 = vadd.f32 1.0, %v1385_v30 }
 0x1b2   : > { %1386 = vrcp.f32 %v732_v31  ;;  %v744_v35 = vand.u32 2147483648, %v732_v31  ;;  %vm738_vm3 = vweird.f32 %v732_v31  ;;  %v742_v37 = vand.u32 2147483647, %v732_v31 }
 0x1b4   : > { %v745_v39 = vor.u32 1.1754944e-38, %v744_v35  ;;  %vm743_vm6 = vcmp.eq.f32.partialorder %v742_v37, 8.507059e+37 }
 0x1b8   : > { %v1387_v33 = vpop.eup %1386 }
 0x1b9   : > { %v734_v34 = vmul.f32 %v1387_v33, %v732_v31  ;;  %vm739_vm4 = vweird.f32 %v1387_v33 }
 0x1ba   : > { %vm740_vm5 = vmor %vm738_vm3, %vm739_vm4 }
 0x1bb   : > { %v735_v36 = vsub.f32 1.0, %v734_v34 }
 0x1bd   : > { %v736_v38 = vmul.f32 %v1387_v33, %v735_v36 }
 0x1bf   : > { %v737_v40 = vadd.f32 %v1387_v33, %v736_v38 }
 0x1c1   : > { %v741_v41 = vsel %vm740_vm5, %v1387_v33, %v737_v40 }
 0x1c2   : > { %v746_v42 = vsel %vm743_vm6, %v745_v39, %v741_v41 }
 0x1c3   : > { %750 = vperm.xlu2 %1378, %v746_v42  }
 0x1e9   : > { %756 = vxpose.xlu2.b32.start.end [1/1] (short) (narrow) %v1671_v48, 16  ;;  %v664_v48 = vld [vmem:[%s1844_s6 + $0x68] sm:$0xff] }
 0x1ea   : > { %671 = vmatpush.msrb.mxu1 %v664_v48 }
 0x1ec   : > { %672 = vmatpush.msrb.mxu1 %v663_v51 }
 0x1ee   : > { %673 = vmatpush.msrb.mxu1 %v662_v32 }
 0x1f0   : > { %674 = vmatpush.msrb.mxu1 %v661_v52 }
 0x1f2   : > { %675 = vmatpush.msrb.mxu1 %v660_v53 }
 0x1f4   : > { %676 = vmatpush.msrb.mxu1 %v659_v54 }
 0x1f6   : > { %677 = vmatpush.msrb.mxu1 %v658_v55 }
 0x1f8   : > { %678 = vmatpush.msrb.mxu1 %v657_v56 }
 0x1fa   : > { %679 = vmatpush.msrb.mxu1 %v656_v57 }
 0x1fc   : > { %680 = vmatpush.msrb.mxu1 %v655_v58 }
 0x1fe   : > { %681 = vmatpush.msrb.mxu1 %v654_v59 }
 0x200   : > { %682 = vmatpush.msrb.mxu1 %v653_v60 }
 0x202   : > { %683 = vmatpush.msrb.mxu1 %v652_v61 }
 0x204   : > { %684 = vmatpush.msrb.mxu1 %v651_v62 }
 0x21c   : > { %v623_v44 = vpop.xlane.xlu1 %622 }
 0x21d   : > { %v624_v45 = vmul.f32 0.03125, %v623_v44  ;;  %v751_v17 = vpop.permute.xlu2 %750 }
 0x21f   : > { %v625_v46 = vsub.f32 %v620_v29, %v624_v45 }
 0x221   : > { %v627_v47 = vmul.f32 %v625_v46, %v625_v46 }
 0x223   : > { %v628_v49 = vsel %vm626_vm7, %v627_v47, 0.0 }
 0x224   : > { %629 = vadd.xlane.f32.xlu1 %v628_v49 }
 0x282   : > { %v772_v21 = vpop.trf.xlu2 }
 0x28a   : > { %v773_v23 = vpop.trf.xlu2 }
 0x297   : > { %v630_v63 = vpop.xlane.xlu1 %629 }
 0x298   : > { %v631_v0 = vmul.f32 0.03125, %v630_v63 }
 0x29a   : > { %v632_v1 = vadd.f32 1e-05, %v631_v0 }
 0x29c   : > { %1388 = vrsqrt.f32 %v632_v1  ;;  %vm639_vm9 = vweird.f32 %v632_v1 }
 0x2a2   : > { %v1389_v2 = vpop.eup %1388 }
 0x2a3   : > { %v634_v3 = vmul.f32 %v1389_v2, %v632_v1  ;;  %vm640_vm8 = vweird.f32 %v1389_v2 }
 0x2a4   : > { %vm641_vm10 = vmor %vm639_vm9, %vm640_vm8 }
 0x2a5   : > { %v635_v4 = vmul.f32 %v1389_v2, %v634_v3 }
 0x2a7   : > { %v636_v7 = vmul.f32 0.5, %v635_v4 }
 0x2a9   : > { %v637_v8 = vsub.f32 1.5, %v636_v7 }
 0x2ab   : > { %v638_v9 = vmul.f32 %v1389_v2, %v637_v8 }
 0x2ad   : > { %v642_v11 = vsel %vm641_vm10, %v1389_v2, %v638_v9 }
 0x2ae   : > { %v643_v12 = vmul.f32 %v642_v11, %v625_v46 }
 0x2b0   : > { %v646_v14 = vmul.f32 %v1381_v10, %v643_v12 }
 0x2b2   : > { %v649_v15 = vadd.f32 %v1382_v13, %v646_v14 }
 0x2b4   : > { %v650_v16 = vmax.f32 %v649_v15, 0.0 }
 0x2b6   : > { %685 = vmatmul.f32.vlgmr.msrb.gmra.mxu1 %v650_v16 }
 0x333   : > { %v686_v19 = vpop.f32.mrf.mxu1 }
 0x334   : > { %v687_v20 = vadd.f32 %v1383_v18, %v686_v19 }
 0x336   : > { %v753_v22 = vmul.f32 %v751_v17, %v687_v20 }
 0x338   : > { %810 = vmatpush.msrb.mxu3 %v753_v22 }
 0x339   : > { %1288 = vmatmul.msk.f32.vlgmr.msrb.gmra.mxu3 %vm788_vm11, %v772_v21 }
 0x341   : > { %1289 = vmatmul.msk.f32.gmra.mxu3 %vm788_vm11, %v773_v23 }
 0x3bc   : > { %v812_v25 = vpop.f32.mrf.mxu3 }
 0x3bd   : > { %v818_v26 = vadd.f32 %v812_v25, %v754_v24 }
 0x3bf   : > { %820 = vst [vmem:[#allocation2] sm:$0xff] %v818_v26 }
 0x3c3   : > { %825 = sbr.rel (%p1290_p8) target bundleno = 1188 (0x4a4), region = 80 }
 0x3c4   : > { %v815_v28 = vpop.f32.mrf.mxu3 }
 0x3c5   : > { %v819_v29 = vadd.f32 %v815_v28, %v755_v27 }
 0x3c7   : > { %821 = vst [vmem:[#allocation2 + $0x8] sm:$0xff] %v819_v29 }
 0x3c8   : > { %v858_v30 = vld [vmem:[#allocation7 + $0x168] sm:$0xff]  ;;  %v859_v31 = vld [vmem:[#allocation7 + $0x170] sm:$0xff]  ;;  %v857_v35 = vld [vmem:[#allocation7 + $0x158] sm:$0xff] }
 0x3c9   : > { %v890_v33 = vld [vmem:[#allocation7 + $0x2e8] sm:$0xff]  ;;  %898 = vmatpush.msra.mxu0 %v858_v30  ;;  %944 = vmatpush.msra.mxu2 %v859_v31  ;;  %v856_v34 = vld [vmem:[#allocation7 + $0x150] sm:$0xff]  ;;  %v854_v38 = vld [vmem:[#allocation7 + $0x138] sm:$0xff] }
 0x3ca   : > { %v891_v36 = vld [vmem:[#allocation7 + $0x2f0] sm:$0xff]  ;;  %921 = vmatpush.msra.mxu1 %v890_v33  ;;  %v855_v39 = vld [vmem:[#allocation7 + $0x140] sm:$0xff]  ;;  %v889_v40 = vld [vmem:[#allocation7 + $0x2d8] sm:$0xff] }
 0x3cb   : > { %967 = vmatpush.msra.mxu3 %v891_v36  ;;  %v888_v37 = vld [vmem:[#allocation7 + $0x2d0] sm:$0xff]  ;;  %899 = vmatpush.msra.mxu0 %v856_v34  ;;  %v886_v41 = vld [vmem:[#allocation7 + $0x2b8] sm:$0xff]  ;;  %v852_v42 = vld [vmem:[#allocation7 + $0x120] sm:$0xff] }
 0x3cc   : > { %945 = vmatpush.msra.mxu2 %v857_v35  ;;  %922 = vmatpush.msra.mxu1 %v888_v37  ;;  %v853_v43 = vld [vmem:[#allocation7 + $0x128] sm:$0xff]  ;;  %v887_v44 = vld [vmem:[#allocation7 + $0x2c0] sm:$0xff]  ;;  %v851_v49 = vld [vmem:[#allocation7 + $0x110] sm:$0xff] }
 0x3cd   : > { %968 = vmatpush.msra.mxu3 %v889_v40  ;;  %900 = vmatpush.msra.mxu0 %v854_v38  ;;  %v884_v45 = vld [vmem:[#allocation7 + $0x2a0] sm:$0xff]  ;;  %v885_v46 = vld [vmem:[#allocation7 + $0x2a8] sm:$0xff]  ;;  %v883_v48 = vld [vmem:[#allocation7 + $0x290] sm:$0xff] }
 0x3ce   : > { %946 = vmatpush.msra.mxu2 %v855_v39  ;;  %923 = vmatpush.msra.mxu1 %v886_v41  ;;  %v850_v47 = vld [vmem:[#allocation7 + $0x108] sm:$0xff]  ;;  %v848_v51 = vld [vmem:[#allocation7 + $0xf0] sm:$0xff]  ;;  %v849_v32 = vld [vmem:[#allocation7 + $0xf8] sm:$0xff] }
 0x3cf   : > { %969 = vmatpush.msra.mxu3 %v887_v44  ;;  %901 = vmatpush.msra.mxu0 %v852_v42  ;;  %v882_v50 = vld [vmem:[#allocation7 + $0x288] sm:$0xff]  ;;  %v880_v52 = vld [vmem:[#allocation7 + $0x270] sm:$0xff]  ;;  %v881_v53 = vld [vmem:[#allocation7 + $0x278] sm:$0xff] }
 0x3d0   : > { %947 = vmatpush.msra.mxu2 %v853_v43  ;;  %924 = vmatpush.msra.mxu1 %v884_v45  ;;  %v846_v54 = vld [vmem:[#allocation7 + $0xd8] sm:$0xff]  ;;  %v847_v55 = vld [vmem:[#allocation7 + $0xe0] sm:$0xff]  ;;  %v845_v59 = vld [vmem:[#allocation7 + $0xc8] sm:$0xff] }
 0x3d1   : > { %970 = vmatpush.msra.mxu3 %v885_v46  ;;  %902 = vmatpush.msra.mxu0 %v850_v47  ;;  %v878_v56 = vld [vmem:[#allocation7 + $0x258] sm:$0xff]  ;;  %v879_v57 = vld [vmem:[#allocation7 + $0x260] sm:$0xff]  ;;  %v877_v61 = vld [vmem:[#allocation7 + $0x248] sm:$0xff] }
 0x3d2   : > { %948 = vmatpush.msra.mxu2 %v851_v49  ;;  %925 = vmatpush.msra.mxu1 %v882_v50  ;;  %v844_v58 = vld [vmem:[#allocation7 + $0xc0] sm:$0xff]  ;;  %v842_v62 = vld [vmem:[#allocation7 + $0xa8] sm:$0xff]  ;;  %v843_v63 = vld [vmem:[#allocation7 + $0xb0] sm:$0xff] }
 0x3d3   : > { %971 = vmatpush.msra.mxu3 %v883_v48  ;;  %903 = vmatpush.msra.mxu0 %v848_v51  ;;  %v876_v60 = vld [vmem:[#allocation7 + $0x240] sm:$0xff]  ;;  %v874_v0 = vld [vmem:[#allocation7 + $0x228] sm:$0xff]  ;;  %v875_v1 = vld [vmem:[#allocation7 + $0x230] sm:$0xff] }
 0x3d4   : > { %949 = vmatpush.msra.mxu2 %v849_v32  ;;  %926 = vmatpush.msra.mxu1 %v880_v52  ;;  %v840_v2 = vld [vmem:[#allocation7 + $0x90] sm:$0xff]  ;;  %v841_v3 = vld [vmem:[#allocation7 + $0x98] sm:$0xff]  ;;  %v839_v9 = vld [vmem:[#allocation7 + $0x80] sm:$0xff] }
 0x3d5   : > { %972 = vmatpush.msra.mxu3 %v881_v53  ;;  %904 = vmatpush.msra.mxu0 %v846_v54  ;;  %v872_v4 = vld [vmem:[#allocation7 + $0x210] sm:$0xff]  ;;  %v873_v7 = vld [vmem:[#allocation7 + $0x218] sm:$0xff]  ;;  %v871_v11 = vld [vmem:[#allocation7 + $0x200] sm:$0xff] }
 0x3d6   : > { %950 = vmatpush.msra.mxu2 %v847_v55  ;;  %927 = vmatpush.msra.mxu1 %v878_v56  ;;  %v838_v8 = vld [vmem:[#allocation7 + $0x78] sm:$0xff]  ;;  %v836_v12 = vld [vmem:[#allocation7 + $0x60] sm:$0xff]  ;;  %v837_v13 = vld [vmem:[#allocation7 + $0x68] sm:$0xff] }
 0x3d7   : > { %973 = vmatpush.msra.mxu3 %v879_v57  ;;  %905 = vmatpush.msra.mxu0 %v844_v58  ;;  %v870_v10 = vld [vmem:[#allocation7 + $0x1f8] sm:$0xff]  ;;  %v868_v14 = vld [vmem:[#allocation7 + $0x1e0] sm:$0xff]  ;;  %v869_v15 = vld [vmem:[#allocation7 + $0x1e8] sm:$0xff] }
 0x3d8   : > { %951 = vmatpush.msra.mxu2 %v845_v59  ;;  %928 = vmatpush.msra.mxu1 %v876_v60  ;;  %v834_v16 = vld [vmem:[#allocation7 + $0x48] sm:$0xff]  ;;  %v835_v17 = vld [vmem:[#allocation7 + $0x50] sm:$0xff]  ;;  %v833_v21 = vld [vmem:[#allocation7 + $0x38] sm:$0xff] }
 0x3d9   : > { %974 = vmatpush.msra.mxu3 %v877_v61  ;;  %906 = vmatpush.msra.mxu0 %v842_v62  ;;  %v866_v18 = vld [vmem:[#allocation7 + $0x1c8] sm:$0xff]  ;;  %v867_v19 = vld [vmem:[#allocation7 + $0x1d0] sm:$0xff]  ;;  %v865_v23 = vld [vmem:[#allocation7 + $0x1b8] sm:$0xff] }
 0x3da   : > { %952 = vmatpush.msra.mxu2 %v843_v63  ;;  %929 = vmatpush.msra.mxu1 %v874_v0  ;;  %v832_v20 = vld [vmem:[#allocation7 + $0x30] sm:$0xff]  ;;  %v830_v24 = vld [vmem:[#allocation7 + $0x18] sm:$0xff]  ;;  %v831_v25 = vld [vmem:[#allocation7 + $0x20] sm:$0xff] }
 0x3db   : > { %975 = vmatpush.msra.mxu3 %v875_v1  ;;  %907 = vmatpush.msra.mxu0 %v840_v2  ;;  %v864_v22 = vld [vmem:[#allocation7 + $0x1b0] sm:$0xff]  ;;  %v862_v26 = vld [vmem:[#allocation7 + $0x198] sm:$0xff]  ;;  %v863_v27 = vld [vmem:[#allocation7 + $0x1a0] sm:$0xff] }
 0x3dc   : > { %953 = vmatpush.msra.mxu2 %v841_v3  ;;  %930 = vmatpush.msra.mxu1 %v872_v4  ;;  %v828_v28 = vld [vmem:[#allocation7] sm:$0xff]  ;;  %v829_v29 = vld [vmem:[#allocation7 + $0x8] sm:$0xff]  ;;  %v1133_v34 = vld [vmem:[#allocation7 + $0x2f8] sm:$0xff] }
 0x3dd   : > { %976 = vmatpush.msra.mxu3 %v873_v7  ;;  %908 = vmatpush.msra.mxu0 %v838_v8  ;;  %v1788_v30 = vld [vmem:[#allocation2] sm:$0xff]  ;;  %v860_v31 = vld [vmem:[#allocation7 + $0x180] sm:$0xff]  ;;  %v1092_v35 = vld [vmem:[#allocation7 + $0x178] sm:$0xff] }
 0x3de   : > { %954 = vmatpush.msra.mxu2 %v839_v9  ;;  %931 = vmatpush.msra.mxu1 %v870_v10  ;;  %v861_v33 = vld [vmem:[#allocation7 + $0x188] sm:$0xff]  ;;  %v1132_v36 = vld [vmem:[#allocation7 + $0x2e0] sm:$0xff]  ;;  %v1130_v40 = vld [vmem:[#allocation7 + $0x2b0] sm:$0xff] }
 0x3df   : > { %977 = vmatpush.msra.mxu3 %v871_v11  ;;  %909 = vmatpush.msra.mxu0 %v836_v12  ;;  %v1091_v37 = vld [vmem:[#allocation7 + $0x160] sm:$0xff]  ;;  %v1131_v38 = vld [vmem:[#allocation7 + $0x2c8] sm:$0xff]  ;;  %v1794_v41 = vld [vmem:[#allocation2 + $0x8] sm:$0xff] }
 0x3e0   : > { %955 = vmatpush.msra.mxu2 %v837_v13  ;;  %932 = vmatpush.msra.mxu1 %v868_v14  ;;  %v1090_v39 = vld [vmem:[#allocation7 + $0x148] sm:$0xff]  ;;  %v1089_v42 = vld [vmem:[#allocation7 + $0x130] sm:$0xff]  ;;  %v1129_v43 = vld [vmem:[#allocation7 + $0x298] sm:$0xff] }
 0x3e1   : > { %978 = vmatpush.msra.mxu3 %v869_v15  ;;  %910 = vmatpush.msra.mxu0 %v834_v16  ;;  %v1088_v44 = vld [vmem:[#allocation7 + $0x118] sm:$0xff]  ;;  %v1128_v45 = vld [vmem:[#allocation7 + $0x280] sm:$0xff]  ;;  %v1127_v47 = vld [vmem:[#allocation7 + $0x268] sm:$0xff] }
 0x3e2   : > { %956 = vmatpush.msra.mxu2 %v835_v17  ;;  %933 = vmatpush.msra.mxu1 %v866_v18  ;;  %v1087_v46 = vld [vmem:[#allocation7 + $0x100] sm:$0xff]  ;;  %v1086_v49 = vld [vmem:[#allocation7 + $0xe8] sm:$0xff]  ;;  %v1126_v50 = vld [vmem:[#allocation7 + $0x250] sm:$0xff] }
 0x3e3   : > { %979 = vmatpush.msra.mxu3 %v867_v19  ;;  %911 = vmatpush.msra.mxu0 %v832_v20  ;;  %v1085_v48 = vld [vmem:[#allocation7 + $0xd0] sm:$0xff]  ;;  %v1125_v51 = vld [vmem:[#allocation7 + $0x238] sm:$0xff]  ;;  %v1124_v52 = vld [vmem:[#allocation7 + $0x220] sm:$0xff] }
 0x3e4   : > { %957 = vmatpush.msra.mxu2 %v833_v21  ;;  %934 = vmatpush.msra.mxu1 %v864_v22  ;;  %v1084_v32 = vld [vmem:[#allocation7 + $0xb8] sm:$0xff]  ;;  %v1083_v53 = vld [vmem:[#allocation7 + $0xa0] sm:$0xff]  ;;  %v1123_v54 = vld [vmem:[#allocation7 + $0x208] sm:$0xff] }
 0x3e5   : > { %980 = vmatpush.msra.mxu3 %v865_v23  ;;  %912 = vmatpush.msra.mxu0 %v830_v24  ;;  %v1082_v55 = vld [vmem:[#allocation7 + $0x88] sm:$0xff]  ;;  %v1122_v56 = vld [vmem:[#allocation7 + $0x1f0] sm:$0xff]  ;;  %v1121_v58 = vld [vmem:[#allocation7 + $0x1d8] sm:$0xff] }
 0x3e6   : > { %958 = vmatpush.msra.mxu2 %v831_v25  ;;  %935 = vmatpush.msra.mxu1 %v862_v26  ;;  %v1081_v57 = vld [vmem:[#allocation7 + $0x70] sm:$0xff]  ;;  %v1080_v59 = vld [vmem:[#allocation7 + $0x58] sm:$0xff]  ;;  %v1120_v60 = vld [vmem:[#allocation7 + $0x1c0] sm:$0xff] }
 0x3e7   : > { %981 = vmatpush.msra.mxu3 %v863_v27  ;;  %913 = vmatpush.msra.mxu0 %v828_v28  ;;  %v1079_v61 = vld [vmem:[#allocation7 + $0x40] sm:$0xff]  ;;  %v1119_v62 = vld [vmem:[#allocation7 + $0x1a8] sm:$0xff]  ;;  %v1118_v0 = vld [vmem:[#allocation7 + $0x190] sm:$0xff] }
 0x3e8   : > { %959 = vmatpush.msra.mxu2 %v829_v29  ;;  %914 = vmatmul.f32.vlgmr.msra.gmra.mxu0 %v1788_v30  ;;  %v1078_v63 = vld [vmem:[#allocation7 + $0x28] sm:$0xff]  ;;  %v1077_v1 = vld [vmem:[#allocation7 + $0x10] sm:$0xff] }
 0x3e9   : > { %936 = vmatpush.msra.mxu1 %v860_v31  ;;  %960 = vmatmul.f32.vlgmr.msra.gmra.mxu2 %v1788_v30  ;;  %v892_v2 = vld [vmem:[%s1848_s10] ss:$2 sm:$0x3]  ;;  %v1291_v4 = vld [vmem:[%s1848_s10 + $0x1] ss:$2 sm:$0x3] }
 0x3ea   : > { %982 = vmatpush.msra.mxu3 %v861_v33  ;;  %937 = vmatmul.f32.vlgmr.msra.gmra.mxu1 %v1659_v6  ;;  %v894_v3 = vperm.slane %v892_v2, 0  ;;  %v993_v9 = vperm.slane %v1291_v4, 0  ;;  %v895_v12 = vperm.slane %v892_v2, 1  ;;  %v994_v18 = vperm.slane %v1291_v4, 1 }
 0x3eb   : > { %1136 = vmatpush.msrb.mxu1 %v1133_v34  ;;  %983 = vmatmul.f32.vlgmr.msra.gmra.mxu3 %v1659_v6 }
 0x3ec   : > { %1095 = vmatpush.msrb.mxu0 %v1092_v35  ;;  %1316 = vmatpush.msrb.mxu3 %v1133_v34 }
 0x3ed   : > { %1137 = vmatpush.msrb.mxu1 %v1132_v36  ;;  %1300 = vmatpush.msrb.mxu2 %v1092_v35 }
 0x3ee   : > { %1096 = vmatpush.msrb.mxu0 %v1091_v37  ;;  %1317 = vmatpush.msrb.mxu3 %v1132_v36 }
 0x3ef   : > { %1138 = vmatpush.msrb.mxu1 %v1131_v38  ;;  %1301 = vmatpush.msrb.mxu2 %v1091_v37 }
 0x3f0   : > { %1097 = vmatpush.msrb.mxu0 %v1090_v39  ;;  %1318 = vmatpush.msrb.mxu3 %v1131_v38 }
 0x3f1   : > { %1139 = vmatpush.msrb.mxu1 %v1130_v40  ;;  %917 = vmatmul.f32.gmra.mxu0 %v1794_v41 }
 0x3f2   : > { %963 = vmatmul.f32.gmra.mxu2 %v1794_v41  ;;  %1098 = vmatpush.msrb.mxu0 %v1089_v42 }
 0x3f3   : > { %1302 = vmatpush.msrb.mxu2 %v1090_v39  ;;  %1319 = vmatpush.msrb.mxu3 %v1130_v40 }
 0x3f4   : > { %1140 = vmatpush.msrb.mxu1 %v1129_v43  ;;  %986 = vmatmul.f32.gmra.mxu3 %v1652_v5 }
 0x3f5   : > { %940 = vmatmul.f32.gmra.mxu1 %v1652_v5  ;;  %1303 = vmatpush.msrb.mxu2 %v1089_v42 }
 0x3f6   : > { %1099 = vmatpush.msrb.mxu0 %v1088_v44  ;;  %1320 = vmatpush.msrb.mxu3 %v1129_v43 }
 0x3f7   : > { %1141 = vmatpush.msrb.mxu1 %v1128_v45  ;;  %1304 = vmatpush.msrb.mxu2 %v1088_v44 }
 0x3f8   : > { %1100 = vmatpush.msrb.mxu0 %v1087_v46  ;;  %1321 = vmatpush.msrb.mxu3 %v1128_v45 }
 0x3f9   : > { %1142 = vmatpush.msrb.mxu1 %v1127_v47  ;;  %1305 = vmatpush.msrb.mxu2 %v1087_v46 }
 0x3fa   : > { %1101 = vmatpush.msrb.mxu0 %v1086_v49  ;;  %1322 = vmatpush.msrb.mxu3 %v1127_v47 }
 0x3fb   : > { %1143 = vmatpush.msrb.mxu1 %v1126_v50  ;;  %1306 = vmatpush.msrb.mxu2 %v1086_v49 }
 0x3fc   : > { %1102 = vmatpush.msrb.mxu0 %v1085_v48  ;;  %1323 = vmatpush.msrb.mxu3 %v1126_v50 }
 0x3fd   : > { %1144 = vmatpush.msrb.mxu1 %v1125_v51  ;;  %1307 = vmatpush.msrb.mxu2 %v1085_v48 }
 0x3fe   : > { %1103 = vmatpush.msrb.mxu0 %v1084_v32  ;;  %1324 = vmatpush.msrb.mxu3 %v1125_v51  ;;  %v1390_v51 = vld [vmem:[%s1848_s10 + $0x5] ss:$0 sm:$0xff] }
 0x3ff   : > { %1145 = vmatpush.msrb.mxu1 %v1124_v52  ;;  %1308 = vmatpush.msrb.mxu2 %v1084_v32 }
 0x400   : > { %1104 = vmatpush.msrb.mxu0 %v1083_v53  ;;  %1325 = vmatpush.msrb.mxu3 %v1124_v52 }
 0x401   : > { %1146 = vmatpush.msrb.mxu1 %v1123_v54  ;;  %1309 = vmatpush.msrb.mxu2 %v1083_v53 }
 0x402   : > { %1105 = vmatpush.msrb.mxu0 %v1082_v55  ;;  %1326 = vmatpush.msrb.mxu3 %v1123_v54 }
 0x403   : > { %1147 = vmatpush.msrb.mxu1 %v1122_v56  ;;  %1310 = vmatpush.msrb.mxu2 %v1082_v55  ;;  %v1391_v55 = vld [vmem:[%s1848_s10 + $0x4] ss:$0 sm:$0xff] }
 0x404   : > { %1106 = vmatpush.msrb.mxu0 %v1081_v57  ;;  %1327 = vmatpush.msrb.mxu3 %v1122_v56 }
 0x405   : > { %1148 = vmatpush.msrb.mxu1 %v1121_v58  ;;  %1311 = vmatpush.msrb.mxu2 %v1081_v57 }
 0x406   : > { %1107 = vmatpush.msrb.mxu0 %v1080_v59  ;;  %1328 = vmatpush.msrb.mxu3 %v1121_v58 }
 0x407   : > { %1149 = vmatpush.msrb.mxu1 %v1120_v60  ;;  %1312 = vmatpush.msrb.mxu2 %v1080_v59 }
 0x408   : > { %1108 = vmatpush.msrb.mxu0 %v1079_v61  ;;  %1329 = vmatpush.msrb.mxu3 %v1120_v60 }
 0x409   : > { %1150 = vmatpush.msrb.mxu1 %v1119_v62  ;;  %1313 = vmatpush.msrb.mxu2 %v1079_v61 }
 0x40a   : > { %1109 = vmatpush.msrb.mxu0 %v1078_v63  ;;  %1330 = vmatpush.msrb.mxu3 %v1119_v62 }
 0x40b   : > { %1151 = vmatpush.msrb.mxu1 %v1118_v0  ;;  %1314 = vmatpush.msrb.mxu2 %v1078_v63 }
 0x40c   : > { %1152 = vmatmul.f32.vlgmr.msrb.gmra.mxu1 %v1659_v6  ;;  %1110 = vmatpush.msrb.mxu0 %v1077_v1 }
 0x40d   : > { %1331 = vmatpush.msrb.mxu3 %v1118_v0  ;;  %1111 = vmatmul.f32.vlgmr.msrb.gmra.mxu0 %v1788_v30 }
 0x40e   : > { %1155 = vmatmul.f32.vlgmr.msrb.gmra.mxu3 %v1652_v5  ;;  %1315 = vmatpush.msrb.mxu2 %v1077_v1 }
 0x40f   : > { %1114 = vmatmul.f32.vlgmr.msrb.gmra.mxu2 %v1794_v41 }
 0x465   : > { %v915_v7 = vpop.f32.mrf.mxu0 }
 0x466   : > { %v916_v8 = vadd.f32 %v915_v7, %v894_v3 }
 0x467   : > { %v938_v10 = vpop.f32.mrf.mxu1 }
 0x468   : > { %v939_v11 = vadd.f32 %v938_v10, %v916_v8 }
 0x46a   : > { %v997_v13 = vadd.f32 %v993_v9, %v939_v11 }
 0x46c   : > { %v961_v14 = vpop.f32.mrf.mxu2  ;;  %v1292_v15 = vmul.f32 -1.442695, %v997_v13 }
 0x46d   : > { %v962_v16 = vadd.f32 %v961_v14, %v895_v12 }
 0x46e   : > { %v984_v17 = vpop.f32.mrf.mxu3  ;;  %v918_v19 = vpop.f32.mrf.mxu0  ;;  %1392 = vpow2.f32 %v1292_v15 }
 0x46f   : > { %v919_v20 = vadd.f32 %v918_v19, %v894_v3  ;;  %v985_v21 = vadd.f32 %v984_v17, %v962_v16 }
 0x471   : > { %v998_v22 = vadd.f32 %v994_v18, %v985_v21 }
 0x472   : > { %v941_v23 = vpop.f32.mrf.mxu1 }
 0x473   : > { %v942_v24 = vadd.f32 %v941_v23, %v919_v20  ;;  %v1293_v25 = vmul.f32 -1.442695, %v998_v22 }
 0x474   : > { %v1393_v28 = vpop.eup %1392 }
 0x475   : > { %v999_v26 = vadd.f32 %v993_v9, %v942_v24  ;;  %v964_v27 = vpop.f32.mrf.mxu2  ;;  %1394 = vpow2.f32 %v1293_v25  ;;  %v1013_v30 = vadd.f32 1.0, %v1393_v28 }
 0x476   : > { %v965_v29 = vadd.f32 %v964_v27, %v895_v12 }
 0x477   : > { %v1294_v31 = vmul.f32 -1.442695, %v999_v26  ;;  %v987_v33 = vpop.f32.mrf.mxu3  ;;  %1396 = vrcp.f32 %v1013_v30  ;;  %v1028_v44 = vand.u32 2147483648, %v1013_v30  ;;  %v1026_v46 = vand.u32 2147483647, %v1013_v30 }
 0x478   : > { %v988_v34 = vadd.f32 %v987_v33, %v965_v29  ;;  %vm1022_vm13 = vweird.f32 %v1013_v30 }
 0x479   : > { %1398 = vpow2.f32 %v1294_v31  ;;  %v1029_v52 = vor.u32 1.1754944e-38, %v1028_v44  ;;  %vm1027_vm15 = vcmp.eq.f32.partialorder %v1026_v46, 8.507059e+37 }
 0x47a   : > { %v1000_v35 = vadd.f32 %v994_v18, %v988_v34 }
 0x47b   : > { %v1395_v36 = vpop.eup %1394 }
 0x47c   : > { %v1014_v37 = vadd.f32 1.0, %v1395_v36  ;;  %v1295_v38 = vmul.f32 -1.442695, %v1000_v35 }
 0x47d   : > { %v1397_v39 = vpop.eup %1396 }
 0x47e   : > { %1400 = vrcp.f32 %v1014_v37  ;;  %v1018_v41 = vmul.f32 %v1397_v39, %v1013_v30  ;;  %vm1023_vm12 = vweird.f32 %v1397_v39  ;;  %v1043_v62 = vand.u32 2147483648, %v1014_v37 }
 0x47f   : > { %v1399_v40 = vpop.eup %1398  ;;  %1402 = vpow2.f32 %v1295_v38  ;;  %vm1024_vm14 = vmor %vm1022_vm13, %vm1023_vm12  ;;  %vm1037_vm1 = vweird.f32 %v1014_v37  ;;  %v1041_v4 = vand.u32 2147483647, %v1014_v37 }
 0x480   : > { %v1015_v42 = vadd.f32 1.0, %v1399_v40  ;;  %v1019_v43 = vsub.f32 1.0, %v1018_v41  ;;  %v1044_v15 = vor.u32 1.1754944e-38, %v1043_v62 }
 0x481   : > { %vm1042_vm4 = vcmp.eq.f32.partialorder %v1041_v4, 8.507059e+37 }
 0x482   : > { %1404 = vrcp.f32 %v1015_v42  ;;  %v1020_v45 = vmul.f32 %v1397_v39, %v1019_v43  ;;  %v1058_v10 = vand.u32 2147483648, %v1015_v42  ;;  %v1056_v13 = vand.u32 2147483647, %v1015_v42 }
 0x483   : > { %vm1052_vm5 = vweird.f32 %v1015_v42 }
 0x484   : > { %v1401_v47 = vpop.eup %1400  ;;  %v1021_v48 = vadd.f32 %v1397_v39, %v1020_v45  ;;  %v1059_v20 = vor.u32 1.1754944e-38, %v1058_v10  ;;  %vm1057_vm7 = vcmp.eq.f32.partialorder %v1056_v13, 8.507059e+37 }
 0x485   : > { %v1403_v49 = vpop.eup %1402  ;;  %v1033_v50 = vmul.f32 %v1401_v47, %v1014_v37  ;;  %vm1038_vm0 = vweird.f32 %v1401_v47 }
 0x486   : > { %v1813_v32 = vadd.f32 1.0, %v1403_v49  ;;  %v1025_v54 = vsel %vm1024_vm14, %v1397_v39, %v1021_v48  ;;  %vm1819_vm2 = vmor %vm1037_vm1, %vm1038_vm0 }
 0x487   : > { %v1034_v53 = vsub.f32 1.0, %v1033_v50  ;;  %v1030_v57 = vsel %vm1027_vm15, %v1029_v52, %v1025_v54 }
 0x488   : > { %v1405_v56 = vpop.eup %1404  ;;  %1406 = vrcp.f32 %v1813_v32  ;;  %v1073_v27 = vand.u32 2147483648, %v1813_v32  ;;  %vm1067_vm9 = vweird.f32 %v1813_v32  ;;  %v1071_v33 = vand.u32 2147483647, %v1813_v32 }
 0x489   : > { %v1153_v58 = vpop.f32.mrf.mxu1  ;;  %v1035_v59 = vmul.f32 %v1401_v47, %v1034_v53  ;;  %v1048_v61 = vmul.f32 %v1405_v56, %v1015_v42  ;;  %vm1053_vm3 = vweird.f32 %v1405_v56 }
 0x48a   : > { %v1154_v60 = vadd.f32 %v1390_v51, %v1153_v58  ;;  %v1112_v63 = vpop.f32.mrf.mxu0  ;;  %vm1054_vm6 = vmor %vm1052_vm5, %vm1053_vm3  ;;  %v1074_v39 = vor.u32 1.1754944e-38, %v1073_v27  ;;  %vm1072_vm11 = vcmp.eq.f32.partialorder %v1071_v33, 8.507059e+37 }
 0x48b   : > { %v1036_v1 = vadd.f32 %v1401_v47, %v1035_v59  ;;  %v1113_v2 = vadd.f32 %v1391_v55, %v1112_v63  ;;  %v1049_v3 = vsub.f32 1.0, %v1048_v61 }
 0x48c   : > { %v1159_v0 = vmul.f32 %v1154_v60, %v1030_v57 }
 0x48d   : > { %v1050_v9 = vmul.f32 %v1405_v56, %v1049_v3  ;;  %v1040_v12 = vsel %vm1819_vm2, %v1401_v47, %v1036_v1 }
 0x48e   : > { %v1161_v8 = vadd.f32 %v1159_v0, %v1113_v2  ;;  %v1407_v11 = vpop.eup %1406  ;;  %v1045_v19 = vsel %vm1042_vm4, %v1044_v15, %v1040_v12 }
 0x48f   : > { %v1063_v14 = vmul.f32 %v1407_v11, %v1813_v32  ;;  %v1051_v16 = vadd.f32 %v1405_v56, %v1050_v9  ;;  %vm1068_vm8 = vweird.f32 %v1407_v11  ;;  %v1165_v28 = vsub.f32 1.0, %v1045_v19 }
 0x490   : > { %1408 = vtanh.f32 %v1161_v8  ;;  %v1169_v35 = vmul.f32 %v1045_v19, %v1659_v6  ;;  %vm1069_vm10 = vmor %vm1067_vm9, %vm1068_vm8 }
 0x491   : > { %v1156_v17 = vpop.f32.mrf.mxu3  ;;  %v1064_v18 = vsub.f32 1.0, %v1063_v14  ;;  %v1055_v22 = vsel %vm1054_vm6, %v1405_v56, %v1051_v16 }
 0x492   : > { %v1157_v21 = vadd.f32 %v1390_v51, %v1156_v17  ;;  %v1115_v23 = vpop.f32.mrf.mxu2  ;;  %v1060_v25 = vsel %vm1057_vm7, %v1059_v20, %v1055_v22 }
 0x493   : > { %v1065_v24 = vmul.f32 %v1407_v11, %v1064_v18  ;;  %v1116_v26 = vadd.f32 %v1391_v55, %v1115_v23 }
 0x494   : > { %v1160_v29 = vmul.f32 %v1157_v21, %v1060_v25 }
 0x495   : > { %v1066_v31 = vadd.f32 %v1407_v11, %v1065_v24 }
 0x496   : > { %v1409_v30 = vpop.eup %1408  ;;  %v1162_v36 = vadd.f32 %v1160_v29, %v1116_v26 }
 0x497   : > { %v1167_v34 = vmul.f32 %v1409_v30, %v1165_v28  ;;  %v1070_v37 = vsel %vm1069_vm10, %v1407_v11, %v1066_v31 }
 0x498   : > { %1410 = vtanh.f32 %v1162_v36  ;;  %v1075_v40 = vsel %vm1072_vm11, %v1074_v39, %v1070_v37 }
 0x499   : > { %v1171_v38 = vadd.f32 %v1169_v35, %v1167_v34  ;;  %v1166_v41 = vsub.f32 1.0, %v1075_v40  ;;  %v1170_v44 = vmul.f32 %v1075_v40, %v1652_v5 }
 0x49b   : > { %1173 = vst [vmem:[#allocation9] sm:$0xff] %v1171_v38 }
 0x49e   : > { %v1411_v42 = vpop.eup %1410 }
 0x49f   : > { %v1168_v43 = vmul.f32 %v1411_v42, %v1166_v41 }
 0x4a1   : > { %v1172_v45 = vadd.f32 %v1170_v44, %v1168_v43 }
 0x4a3   : > { %1174 = vst [vmem:[#allocation9 + $0x8] sm:$0xff] %v1172_v45 }
 0x4a4 PF: > { %p1355_p9 = scmp.eq.s32.totalorder %s1604_s8, 2  ;;  %s1529_s28 = smov [#allocation9]  }
 0x4a5   : > { %s1180_s29 = sshll.u32 %s1529_s28, 4  ;;  %s1182_s13 = sshll.u32 %s1849_s11, 4  ;;  %s1181_s29 = int_to_ptr.vmem [resolvable:$true] %s1180_s29  ;;  %s1183_s13 = int_to_ptr.hbm [resolvable:$true] %s1182_s13 }
 0x4a6   : > { %s1530_s14 = smov 128   ;;  %s1531_s15 = smov 8  }
 0x4a7   : > { %1341 = dma.vmem_to_hbm [thread:$0]  (%p1355_p9), %s1181_s29, 256, %s1183_s13, [#allocation6], %s1530_s14, %s1530_s14, %s1531_s15  }
 0x4a8   : > { %1513 = dma.done.wait (%p1355_p9), [#allocation6], 256  }
 0x4a9   : > { %1515 = vsyncadd (%p1355_p9), [#allocation6], 4294967040 }
 0x4aa PF: > { %s26_s19 = sadd.s32 1, %s1518_s19  }
 0x4ab   : > { %p23_p10 = scmp.ge.s32.totalorder %s26_s19, 5  }
 0x4ad   :  { %25 = sbr.rel (!%p23_p10) target bundleno = 6 (0x6), region = 115 }
 0x4b2   :  { %1199 = vsyncpa [#allocation5], 1 }
 0x4b3   :  { %1201 = vsyncpa [#allocation5 + $0x1], 1 }
 0x4b4   :  { %1202 = vsyncpa [#allocation8], 1 }
 0x4b5   :  { %1203 = vsyncpa [#allocation6], 1 }
 0x4b6   :  { %1205 = vsyncpa [#allocation6 + $0x1], 1 }

</bundles_post_ra>
